<compile_context>
chip_gen: v5e
topology: v5e:2x2
jax: 0.10.0
libtpu: 0.0.40
codegen_flags: <defaults>
</compile_context>

<pallas_src>
import functools

import jax
import jax.numpy as jnp
from jax.experimental import pallas as pl
from jax.experimental.pallas import tpu as pltpu

LANE = 128      # TPU lane width; channels padded to this so stores are lane-dense.
BN_EPS = 1e-5   # PyTorch BatchNorm1d default.


def _round_up(x, m):
    return (x + m - 1) // m * m


def _pick_batch_block(b, max_bt=8):
    """Largest divisor of the batch <= max_bt (batch elements per grid step)."""
    bt = min(b, max_bt)
    while b % bt:
        bt -= 1
    return bt


# ----------------------------- Pallas kernels --------------------------------

def conv_bn_layer_kernel(x_ref, ss_in_ref, w_ref, gb_ref, y_ref, ss_ref,
                         xin_ref, *, K, L, pad, n, eps, relu_in, mxu_dtype):
    """One grid step of a fused layer:

      normalize previous layer (affine + optional ReLU, VPU)
      -> K-tap 'same' Conv1d (MXU, computed exactly once)
      -> accumulate BN batch statistics across the batch grid axis
      -> emit the raw conv output tile (halo rows zeroed) for the next layer.

    On the last grid step the statistics are folded with gamma/beta/eps into a
    fused (scale, shift) pair consumed by the next layer (or the final apply).

    x_ref    : (Bt, L+2*pad, C_in_p)  previous layer's raw conv output (halo-padded).
    ss_in_ref: (2, C_in_p)            previous layer's fused (scale, shift).
    w_ref    : (K, C_in_p, C_out_p)   conv weights (tap, in, out), VMEM resident.
    gb_ref   : (2, C_out_p)           gamma / beta.
    y_ref    : (Bt, L+2*pad, C_out_p) this layer's raw conv output tile.
    ss_ref   : (2, C_out_p)           resident accumulator -> (scale, shift).
    xin_ref  : (Bt, L+2*pad, C_in_p)  f32 VMEM scratch: normalized inputs.
    """
    b = pl.program_id(0)
    nb = pl.num_programs(0)
    bt = x_ref.shape[0]
    c_in_p = x_ref.shape[2]
    c_out_p = w_ref.shape[2]

    @pl.when(b == 0)
    def _():
        ss_ref[...] = jnp.zeros_like(ss_ref)

    # --- normalize previous layer's raw conv output (interior rows only) -----
    x_int = x_ref[:, pad:pad + L, :].astype(jnp.float32)
    x_int = x_int * ss_in_ref[0:1, :] + ss_in_ref[1:2, :]
    if relu_in:
        x_int = jnp.maximum(x_int, 0.0)
    # Halo rows are the conv's zero padding: write only them as zeros
    # (no full-tile zero pass), interior rows get the normalized values.
    xin_ref[:, :pad, :] = jnp.zeros((bt, pad, c_in_p), jnp.float32)
    xin_ref[:, pad + L:, :] = jnp.zeros((bt, pad, c_in_p), jnp.float32)
    xin_ref[:, pad:pad + L, :] = x_int

    # --- K-tap conv as K shifted MXU matmuls with M = Bt*L rows --------------
    acc = jnp.zeros((bt * L, c_out_p), jnp.float32)
    for k in range(K):                                    # K static -> unrolled
        xk = xin_ref[:, k:k + L, :].reshape(bt * L, c_in_p).astype(mxu_dtype)
        acc = acc + jnp.dot(xk, w_ref[k], preferred_element_type=jnp.float32)

    # --- BN batch statistics of this layer's conv output ---------------------
    ss_ref[0:1, :] += jnp.sum(acc, axis=0, keepdims=True)
    ss_ref[1:2, :] += jnp.sum(acc * acc, axis=0, keepdims=True)

    # --- raw conv output tile for the next layer (zero only halo rows) -------
    y_ref[:, :pad, :] = jnp.zeros((bt, pad, c_out_p), y_ref.dtype)
    y_ref[:, pad + L:, :] = jnp.zeros((bt, pad, c_out_p), y_ref.dtype)
    y_ref[:, pad:pad + L, :] = acc.reshape(bt, L, c_out_p).astype(y_ref.dtype)

    @pl.when(b == nb - 1)
    def _():
        inv_n = 1.0 / n
        mean = ss_ref[0:1, :] * inv_n
        # Single-pass (biased) variance; clamp tiny negatives from cancellation.
        var = jnp.maximum(ss_ref[1:2, :] * inv_n - mean * mean, 0.0)
        scale = gb_ref[0:1, :] * jax.lax.rsqrt(var + eps)
        shift = gb_ref[1:2, :] - mean * scale
        ss_ref[0:1, :] = scale
        ss_ref[1:2, :] = shift


def bn_apply_kernel(y_ref, ss_ref, o_ref, *, L, pad, relu):
    """Final BN affine (+optional ReLU): pure VPU pass over the last layer's
    raw conv output; drops the halo rows."""
    y = y_ref[:, pad:pad + L, :].astype(jnp.float32)
    y = y * ss_ref[0:1, :] + ss_ref[1:2, :]
    if relu:
        y = jnp.maximum(y, 0.0)
    o_ref[...] = y.astype(o_ref.dtype)


# ------------------------------ layer wrappers --------------------------------

def conv_bn_stats_layer(y_prev, ss_prev, layer, *, K, L, pad, relu_in, bt,
                        act_dtype, mxu_dtype, eps=BN_EPS):
    """One fused layer call: normalize-previous + conv (once) + BN stats."""
    B, L_halo, c_in_p = y_prev.shape
    w = layer["w_pad"]                                   # (K, C_in_p, C_out_p)
    gb = layer["gb"]                                     # (2, C_out_p)
    c_out_p = w.shape[2]
    nb = B // bt
    n = float(B * L)                                     # BN reduces over batch x length

    y, ss = pl.pallas_call(
        functools.partial(conv_bn_layer_kernel, K=K, L=L, pad=pad, n=n, eps=eps,
                          relu_in=relu_in, mxu_dtype=mxu_dtype),
        out_shape=(jax.ShapeDtypeStruct((B, L_halo, c_out_p), act_dtype),
                   jax.ShapeDtypeStruct((2, c_out_p), jnp.float32)),
        grid=(nb,),
        in_specs=[
            pl.BlockSpec((bt, L_halo, c_in_p), lambda b: (b, 0, 0)),
            pl.BlockSpec((2, c_in_p), lambda b: (0, 0)),
            pl.BlockSpec((K, c_in_p, c_out_p), lambda b: (0, 0, 0)),
            pl.BlockSpec((2, c_out_p), lambda b: (0, 0)),
        ],
        out_specs=(
            pl.BlockSpec((bt, L_halo, c_out_p), lambda b: (b, 0, 0)),
            pl.BlockSpec((2, c_out_p), lambda b: (0, 0)),
        ),
        scratch_shapes=[pltpu.VMEM((bt, L_halo, c_in_p), jnp.float32)],
        compiler_params=pltpu.CompilerParams(
            dimension_semantics=("arbitrary",)),          # resident stats accumulator
    )(y_prev, ss_prev, w, gb)
    return y, ss


def bn_apply_layer(y, ss, *, L, pad, relu, bt):
    """Final memory-bound affine pass; batch blocks are independent (parallel)."""
    B, L_halo, c_p = y.shape
    return pl.pallas_call(
        functools.partial(bn_apply_kernel, L=L, pad=pad, relu=relu),
        out_shape=jax.ShapeDtypeStruct((B, L, c_p), jnp.float32),
        grid=(B // bt,),
        in_specs=[pl.BlockSpec((bt, L_halo, c_p), lambda b: (b, 0, 0)),
                  pl.BlockSpec((2, c_p), lambda b: (0, 0))],
        out_specs=pl.BlockSpec((bt, L, c_p), lambda b: (b, 0, 0)),
        compiler_params=pltpu.CompilerParams(
            dimension_semantics=("parallel",)),
    )(y, ss)


# ------------------------------ parameters ------------------------------------

def init_conv_bn_params(key, c_in, c_out, kernel_size):
    """PyTorch-default Conv1d + BatchNorm1d parameters."""
    kw, kb = jax.random.split(key)
    bound = 1.0 / (c_in * kernel_size) ** 0.5
    return {
        "w": jax.random.uniform(kw, (c_out, c_in, kernel_size),
                                jnp.float32, -bound, bound),
        "b": jax.random.uniform(kb, (c_out,), jnp.float32, -bound, bound),
        "gamma": jnp.ones((c_out,), jnp.float32),
        "beta": jnp.zeros((c_out,), jnp.float32),
    }


def init_encoder_params(key, input_channels, hidden_channels,
                        kernel_size, num_hidden_layers):
    keys = jax.random.split(key, num_hidden_layers + 2)
    return {
        "input_layer": init_conv_bn_params(
            keys[0], input_channels, hidden_channels, kernel_size),
        "hidden_layers": [
            init_conv_bn_params(keys[1 + i], hidden_channels, hidden_channels,
                                kernel_size)
            for i in range(num_hidden_layers)],
        "output_layer": init_conv_bn_params(
            keys[-1], hidden_channels, hidden_channels, kernel_size),
    }


def pack_layer_params(p, mxu_dtype):
    """Repack torch-layout params into kernel layout.

    weight (C_out, C_in, K) -> (K, C_in_pad, C_out_pad) in mxu_dtype;
    gamma/beta stacked into (2, C_out_pad); channels zero-padded to LANE.
    The conv bias is dropped: training-mode BN subtracts the batch mean, which
    cancels any per-channel constant exactly, so forward semantics are unchanged.
    """
    w = p["w"]
    c_out, c_in, K = w.shape
    c_in_p, c_out_p = _round_up(c_in, LANE), _round_up(c_out, LANE)
    w_pad = jnp.zeros((K, c_in_p, c_out_p), jnp.float32)
    w_pad = w_pad.at[:, :c_in, :c_out].set(jnp.transpose(w, (2, 1, 0)))
    gb = jnp.zeros((2, c_out_p), jnp.float32)
    gb = gb.at[0, :c_out].set(p["gamma"]).at[1, :c_out].set(p["beta"])
    return {"w_pad": w_pad.astype(mxu_dtype), "gb": gb}


def pack_encoder_params(params, mxu_dtype=jnp.float32):
    return {
        "input_layer": pack_layer_params(params["input_layer"], mxu_dtype),
        "hidden_layers": [pack_layer_params(p, mxu_dtype)
                          for p in params["hidden_layers"]],
        "output_layer": pack_layer_params(params["output_layer"], mxu_dtype),
    }


# ------------------------------ forward ----------------------------------------

def encoder_forward(x_ncl, packed, *, kernel_size, padding, hidden_channels,
                    act_dtype=jnp.float32, mxu_dtype=jnp.float32):
    """x_ncl: (B, C_in, L) PyTorch NCL layout -> (B, hidden_channels, L) f32."""
    B, c_in, L = x_ncl.shape
    L_halo = L + 2 * padding
    c_in_p = _round_up(c_in, LANE)
    bt = _pick_batch_block(B)

    # One-time boundary conversion to halo-padded, channel-last, lane-padded
    # layout; every layer stays in this layout (no per-layer XLA glue).
    x_pad = jnp.zeros((B, L_halo, c_in_p), act_dtype)
    x_pad = x_pad.at[:, padding:padding + L, :c_in].set(
        jnp.transpose(x_ncl, (0, 2, 1)).astype(act_dtype))

    # Identity (scale, shift) for the raw network input.
    ss = jnp.concatenate([jnp.ones((1, c_in_p), jnp.float32),
                          jnp.zeros((1, c_in_p), jnp.float32)], axis=0)

    layers = ([packed["input_layer"]] + list(packed["hidden_layers"])
              + [packed["output_layer"]])
    y, relu_in = x_pad, False
    for lp in layers:
        y, ss = conv_bn_stats_layer(
            y, ss, lp, K=kernel_size, L=L, pad=padding, relu_in=relu_in,
            bt=bt, act_dtype=act_dtype, mxu_dtype=mxu_dtype)
        relu_in = True          # every layer except the last is followed by ReLU

    # Output layer ends with BatchNorm only (no ReLU).
    out = bn_apply_layer(y, ss, L=L, pad=padding, relu=False, bt=bt)

    # Boundary conversion back to NCL, dropping padded lanes.
    return jnp.transpose(out[:, :, :hidden_channels], (0, 2, 1))


def reference_forward(x_ncl, params, *, padding, eps=BN_EPS):
    """Pure-JAX reference of the PyTorch module (Conv1d + train-mode BN [+ReLU])."""
    def layer(x, p, relu):
        y = jax.lax.conv_general_dilated(
            x, p["w"], window_strides=(1,), padding=[(padding, padding)],
            dimension_numbers=("NCH", "OIH", "NCH"),
            precision=jax.lax.Precision.HIGHEST)
        y = y + p["b"][None, :, None]
        mean = jnp.mean(y, axis=(0, 2), keepdims=True)
        var = jnp.mean((y - mean) ** 2, axis=(0, 2), keepdims=True)
        y = (y - mean) * jax.lax.rsqrt(var + eps)
        y = y * p["gamma"][None, :, None] + p["beta"][None, :, None]
        return jnp.maximum(y, 0.0) if relu else y

    out = layer(x_ncl, params["input_layer"], True)
    for p in params["hidden_layers"]:
        out = layer(out, p, True)
    return layer(out, params["output_layer"], False)


# ------------------------------- main ------------------------------------------

if __name__ == "__main__":
    input_channels = 4
    hidden_channels = 32
    output_channels = 32        # unused by forward (matches the PyTorch module)
    kernel_size = 11            # padding=5 -> length-preserving conv
    padding = 5
    num_hidden_layers = 2
    embedding_size = 16         # unused by forward
    embedding_dim = 8           # unused by forward
    B, L = 2, 16

    key = jax.random.PRNGKey(0)
    k_params, k_x = jax.random.split(key)
    params = init_encoder_params(k_params, input_channels, hidden_channels,
                                 kernel_size, num_hidden_layers)
    x = jax.random.normal(k_x, (B, input_channels, L), jnp.float32)   # NCL

    ref = reference_forward(x, params, padding=padding)

    # f32 everywhere: tight correctness check against the pure-JAX reference
    # (includes the conv bias the kernel folds out; train-mode BN cancels it).
    packed_f32 = pack_encoder_params(params, mxu_dtype=jnp.float32)
    fwd_f32 = jax.jit(functools.partial(
        encoder_forward, kernel_size=kernel_size, padding=padding,
        hidden_channels=hidden_channels,
        act_dtype=jnp.float32, mxu_dtype=jnp.float32))
    out = jax.block_until_ready(fwd_f32(x, packed_f32))
    assert out.shape == (B, hidden_channels, L), out.shape
    assert bool(jnp.all(jnp.isfinite(out)))
    err_f32 = float(jnp.max(jnp.abs(out - ref)))
    assert err_f32 < 1e-3, f"f32 max |pallas - reference| = {err_f32}"

    # Production config from the perf review: bf16 MXU inputs + bf16 inter-layer
    # activations (all accumulation / BN / ReLU math stays f32).  Looser check.
    packed_bf16 = pack_encoder_params(params, mxu_dtype=jnp.bfloat16)
    fwd_bf16 = jax.jit(functools.partial(
        encoder_forward, kernel_size=kernel_size, padding=padding,
        hidden_channels=hidden_channels,
        act_dtype=jnp.bfloat16, mxu_dtype=jnp.bfloat16))
    out_bf16 = jax.block_until_ready(fwd_bf16(x, packed_bf16))
    assert out_bf16.shape == (B, hidden_channels, L), out_bf16.shape
    assert bool(jnp.all(jnp.isfinite(out_bf16)))
    err_bf16 = float(jnp.max(jnp.abs(out_bf16 - ref)))
    assert err_bf16 < 1e-1, f"bf16 max |pallas - reference| = {err_bf16}"

    print("KERNEL_OK")
</pallas_src>

<mosaic_0001>
module attributes {stable_mosaic.version = 11 : i64} {
  func.func @conv_bn_layer_kernel(%arg0: i32, %arg1: memref<2x26x128xf32, #tpu.memory_space<vmem>>, %arg2: memref<2x128xf32, #tpu.memory_space<vmem>>, %arg3: memref<11x128x128xf32, #tpu.memory_space<vmem>>, %arg4: memref<2x128xf32, #tpu.memory_space<vmem>>, %arg5: memref<2x26x128xf32, #tpu.memory_space<vmem>>, %arg6: memref<2x128xf32, #tpu.memory_space<vmem>>, %arg7: memref<2x26x128xf32, #tpu.memory_space<vmem>>) attributes {dimension_semantics = [#tpu.dimension_semantics<arbitrary>], iteration_bounds = array<i64: 1>, scalar_prefetch = 0 : i64, scratch_operands = 1 : i64, tpu.core_type = #tpu.core_type<tc>, window_params = [{transform_indices = @transform_0, window_bounds = array<i64: 2, 26, 128>}, {pipeline_mode = #tpu.pipeline_mode<synchronous>, transform_indices = @transform_1, window_bounds = array<i64: 2, 128>}, {pipeline_mode = #tpu.pipeline_mode<synchronous>, transform_indices = @transform_2, window_bounds = array<i64: 11, 128, 128>}, {pipeline_mode = #tpu.pipeline_mode<synchronous>, transform_indices = @transform_3, window_bounds = array<i64: 2, 128>}, {transform_indices = @transform_4, window_bounds = array<i64: 2, 26, 128>}, {pipeline_mode = #tpu.pipeline_mode<synchronous>, transform_indices = @transform_5, window_bounds = array<i64: 2, 128>}]} {
    %c0_i32 = arith.constant 0 : i32
    %0 = arith.cmpi eq, %arg0, %c0_i32 : i32
    %1 = arith.extui %0 : i1 to i32
    %c0_i32_0 = arith.constant 0 : i32
    %2 = arith.cmpi ne, %1, %c0_i32_0 : i32
    scf.if %2 {
      %cst_108 = arith.constant 0.000000e+00 : f32
      %106 = vector.broadcast %cst_108 : f32 to vector<2x128xf32>
      %c0_109 = arith.constant 0 : index
      %c0_110 = arith.constant 0 : index
      %107 = vector.load %arg6[%c0_109, %c0_110] : memref<2x128xf32, #tpu.memory_space<vmem>>, vector<2x128xf32>
      tpu.vector_store %arg6[%c0_109, %c0_110], %106 {strides = array<i32>} : memref<2x128xf32, #tpu.memory_space<vmem>>, vector<2x128xf32>,
    } else {
    }
    %c0 = arith.constant 0 : index
    %c5 = arith.constant 5 : index
    %c0_1 = arith.constant 0 : index
    %3 = vector.load %arg1[%c0, %c5, %c0_1] : memref<2x26x128xf32, #tpu.memory_space<vmem>>, vector<2x16x128xf32>
    %c0_2 = arith.constant 0 : index
    %c0_3 = arith.constant 0 : index
    %4 = vector.load %arg2[%c0_2, %c0_3] : memref<2x128xf32, #tpu.memory_space<vmem>>, vector<1x128xf32>
    %5 = vector.shape_cast %4 : vector<1x128xf32> to vector<1x1x128xf32>
    %6 = vector.broadcast %5 : vector<1x1x128xf32> to vector<2x16x128xf32>
    %7 = arith.mulf %3, %6 : vector<2x16x128xf32>
    %c1 = arith.constant 1 : index
    %c0_4 = arith.constant 0 : index
    %8 = vector.load %arg2[%c1, %c0_4] : memref<2x128xf32, #tpu.memory_space<vmem>>, vector<1x128xf32>
    %9 = vector.shape_cast %8 : vector<1x128xf32> to vector<1x1x128xf32>
    %10 = vector.broadcast %9 : vector<1x1x128xf32> to vector<2x16x128xf32>
    %11 = arith.addf %7, %10 : vector<2x16x128xf32>
    %cst = arith.constant 0.000000e+00 : f32
    %12 = vector.broadcast %cst : f32 to vector<2x16x128xf32>
    %13 = arith.maximumf %11, %12 : vector<2x16x128xf32>
    %cst_5 = arith.constant 0.000000e+00 : f32
    %14 = vector.broadcast %cst_5 : f32 to vector<2x5x128xf32>
    %c0_6 = arith.constant 0 : index
    %c0_7 = arith.constant 0 : index
    %c0_8 = arith.constant 0 : index
    %15 = vector.load %arg7[%c0_6, %c0_7, %c0_8] : memref<2x26x128xf32, #tpu.memory_space<vmem>>, vector<2x5x128xf32>
    tpu.vector_store %arg7[%c0_6, %c0_7, %c0_8], %14 {strides = array<i32>} : memref<2x26x128xf32, #tpu.memory_space<vmem>>, vector<2x5x128xf32>,
    %cst_9 = arith.constant 0.000000e+00 : f32
    %16 = vector.broadcast %cst_9 : f32 to vector<2x5x128xf32>
    %c0_10 = arith.constant 0 : index
    %c21 = arith.constant 21 : index
    %c0_11 = arith.constant 0 : index
    %17 = vector.load %arg7[%c0_10, %c21, %c0_11] : memref<2x26x128xf32, #tpu.memory_space<vmem>>, vector<2x5x128xf32>
    tpu.vector_store %arg7[%c0_10, %c21, %c0_11], %16 {strides = array<i32>} : memref<2x26x128xf32, #tpu.memory_space<vmem>>, vector<2x5x128xf32>,
    %c0_12 = arith.constant 0 : index
    %c5_13 = arith.constant 5 : index
    %c0_14 = arith.constant 0 : index
    %18 = vector.load %arg7[%c0_12, %c5_13, %c0_14] : memref<2x26x128xf32, #tpu.memory_space<vmem>>, vector<2x16x128xf32>
    tpu.vector_store %arg7[%c0_12, %c5_13, %c0_14], %13 {strides = array<i32>} : memref<2x26x128xf32, #tpu.memory_space<vmem>>, vector<2x16x128xf32>,
    %cst_15 = arith.constant 0.000000e+00 : f32
    %19 = vector.broadcast %cst_15 : f32 to vector<32x128xf32>
    %c0_16 = arith.constant 0 : index
    %c0_17 = arith.constant 0 : index
    %c0_18 = arith.constant 0 : index
    %20 = vector.load %arg7[%c0_16, %c0_17, %c0_18] : memref<2x26x128xf32, #tpu.memory_space<vmem>>, vector<2x16x128xf32>
    %21 = vector.shape_cast %20 : vector<2x16x128xf32> to vector<32x128xf32>
    %c0_19 = arith.constant 0 : index
    %c0_20 = arith.constant 0 : index
    %c0_21 = arith.constant 0 : index
    %22 = vector.load %arg3[%c0_19, %c0_20, %c0_21] : memref<11x128x128xf32, #tpu.memory_space<vmem>>, vector<1x128x128xf32>
    %23 = vector.shape_cast %22 : vector<1x128x128xf32> to vector<128x128xf32>
    %cst_22 = arith.constant dense<0.000000e+00> : vector<32x128xf32>
    %24 = tpu.matmul %21, %23, %cst_22 {dimension_numbers = #tpu.dot_dimension_numbers<[1], [0], [0], [1], [0, 0, 1, 1], [], []>} : vector<32x128xf32>, vector<128x128xf32>, vector<32x128xf32> -> vector<32x128xf32>
    %25 = arith.addf %19, %24 : vector<32x128xf32>
    %c0_23 = arith.constant 0 : index
    %c1_24 = arith.constant 1 : index
    %c0_25 = arith.constant 0 : index
    %26 = vector.load %arg7[%c0_23, %c1_24, %c0_25] : memref<2x26x128xf32, #tpu.memory_space<vmem>>, vector<2x16x128xf32>
    %27 = vector.shape_cast %26 : vector<2x16x128xf32> to vector<32x128xf32>
    %c1_26 = arith.constant 1 : index
    %c0_27 = arith.constant 0 : index
    %c0_28 = arith.constant 0 : index
    %28 = vector.load %arg3[%c1_26, %c0_27, %c0_28] : memref<11x128x128xf32, #tpu.memory_space<vmem>>, vector<1x128x128xf32>
    %29 = vector.shape_cast %28 : vector<1x128x128xf32> to vector<128x128xf32>
    %cst_29 = arith.constant dense<0.000000e+00> : vector<32x128xf32>
    %30 = tpu.matmul %27, %29, %cst_29 {dimension_numbers = #tpu.dot_dimension_numbers<[1], [0], [0], [1], [0, 0, 1, 1], [], []>} : vector<32x128xf32>, vector<128x128xf32>, vector<32x128xf32> -> vector<32x128xf32>
    %31 = arith.addf %25, %30 : vector<32x128xf32>
    %c0_30 = arith.constant 0 : index
    %c2 = arith.constant 2 : index
    %c0_31 = arith.constant 0 : index
    %32 = vector.load %arg7[%c0_30, %c2, %c0_31] : memref<2x26x128xf32, #tpu.memory_space<vmem>>, vector<2x16x128xf32>
    %33 = vector.shape_cast %32 : vector<2x16x128xf32> to vector<32x128xf32>
    %c2_32 = arith.constant 2 : index
    %c0_33 = arith.constant 0 : index
    %c0_34 = arith.constant 0 : index
    %34 = vector.load %arg3[%c2_32, %c0_33, %c0_34] : memref<11x128x128xf32, #tpu.memory_space<vmem>>, vector<1x128x128xf32>
    %35 = vector.shape_cast %34 : vector<1x128x128xf32> to vector<128x128xf32>
    %cst_35 = arith.constant dense<0.000000e+00> : vector<32x128xf32>
    %36 = tpu.matmul %33, %35, %cst_35 {dimension_numbers = #tpu.dot_dimension_numbers<[1], [0], [0], [1], [0, 0, 1, 1], [], []>} : vector<32x128xf32>, vector<128x128xf32>, vector<32x128xf32> -> vector<32x128xf32>
    %37 = arith.addf %31, %36 : vector<32x128xf32>
    %c0_36 = arith.constant 0 : index
    %c3 = arith.constant 3 : index
    %c0_37 = arith.constant 0 : index
    %38 = vector.load %arg7[%c0_36, %c3, %c0_37] : memref<2x26x128xf32, #tpu.memory_space<vmem>>, vector<2x16x128xf32>
    %39 = vector.shape_cast %38 : vector<2x16x128xf32> to vector<32x128xf32>
    %c3_38 = arith.constant 3 : index
    %c0_39 = arith.constant 0 : index
    %c0_40 = arith.constant 0 : index
    %40 = vector.load %arg3[%c3_38, %c0_39, %c0_40] : memref<11x128x128xf32, #tpu.memory_space<vmem>>, vector<1x128x128xf32>
    %41 = vector.shape_cast %40 : vector<1x128x128xf32> to vector<128x128xf32>
    %cst_41 = arith.constant dense<0.000000e+00> : vector<32x128xf32>
    %42 = tpu.matmul %39, %41, %cst_41 {dimension_numbers = #tpu.dot_dimension_numbers<[1], [0], [0], [1], [0, 0, 1, 1], [], []>} : vector<32x128xf32>, vector<128x128xf32>, vector<32x128xf32> -> vector<32x128xf32>
    %43 = arith.addf %37, %42 : vector<32x128xf32>
    %c0_42 = arith.constant 0 : index
    %c4 = arith.constant 4 : index
    %c0_43 = arith.constant 0 : index
    %44 = vector.load %arg7[%c0_42, %c4, %c0_43] : memref<2x26x128xf32, #tpu.memory_space<vmem>>, vector<2x16x128xf32>
    %45 = vector.shape_cast %44 : vector<2x16x128xf32> to vector<32x128xf32>
    %c4_44 = arith.constant 4 : index
    %c0_45 = arith.constant 0 : index
    %c0_46 = arith.constant 0 : index
    %46 = vector.load %arg3[%c4_44, %c0_45, %c0_46] : memref<11x128x128xf32, #tpu.memory_space<vmem>>, vector<1x128x128xf32>
    %47 = vector.shape_cast %46 : vector<1x128x128xf32> to vector<128x128xf32>
    %cst_47 = arith.constant dense<0.000000e+00> : vector<32x128xf32>
    %48 = tpu.matmul %45, %47, %cst_47 {dimension_numbers = #tpu.dot_dimension_numbers<[1], [0], [0], [1], [0, 0, 1, 1], [], []>} : vector<32x128xf32>, vector<128x128xf32>, vector<32x128xf32> -> vector<32x128xf32>
    %49 = arith.addf %43, %48 : vector<32x128xf32>
    %c0_48 = arith.constant 0 : index
    %c5_49 = arith.constant 5 : index
    %c0_50 = arith.constant 0 : index
    %50 = vector.load %arg7[%c0_48, %c5_49, %c0_50] : memref<2x26x128xf32, #tpu.memory_space<vmem>>, vector<2x16x128xf32>
    %51 = vector.shape_cast %50 : vector<2x16x128xf32> to vector<32x128xf32>
    %c5_51 = arith.constant 5 : index
    %c0_52 = arith.constant 0 : index
    %c0_53 = arith.constant 0 : index
    %52 = vector.load %arg3[%c5_51, %c0_52, %c0_53] : memref<11x128x128xf32, #tpu.memory_space<vmem>>, vector<1x128x128xf32>
    %53 = vector.shape_cast %52 : vector<1x128x128xf32> to vector<128x128xf32>
    %cst_54 = arith.constant dense<0.000000e+00> : vector<32x128xf32>
    %54 = tpu.matmul %51, %53, %cst_54 {dimension_numbers = #tpu.dot_dimension_numbers<[1], [0], [0], [1], [0, 0, 1, 1], [], []>} : vector<32x128xf32>, vector<128x128xf32>, vector<32x128xf32> -> vector<32x128xf32>
    %55 = arith.addf %49, %54 : vector<32x128xf32>
    %c0_55 = arith.constant 0 : index
    %c6 = arith.constant 6 : index
    %c0_56 = arith.constant 0 : index
    %56 = vector.load %arg7[%c0_55, %c6, %c0_56] : memref<2x26x128xf32, #tpu.memory_space<vmem>>, vector<2x16x128xf32>
    %57 = vector.shape_cast %56 : vector<2x16x128xf32> to vector<32x128xf32>
    %c6_57 = arith.constant 6 : index
    %c0_58 = arith.constant 0 : index
    %c0_59 = arith.constant 0 : index
    %58 = vector.load %arg3[%c6_57, %c0_58, %c0_59] : memref<11x128x128xf32, #tpu.memory_space<vmem>>, vector<1x128x128xf32>
    %59 = vector.shape_cast %58 : vector<1x128x128xf32> to vector<128x128xf32>
    %cst_60 = arith.constant dense<0.000000e+00> : vector<32x128xf32>
    %60 = tpu.matmul %57, %59, %cst_60 {dimension_numbers = #tpu.dot_dimension_numbers<[1], [0], [0], [1], [0, 0, 1, 1], [], []>} : vector<32x128xf32>, vector<128x128xf32>, vector<32x128xf32> -> vector<32x128xf32>
    %61 = arith.addf %55, %60 : vector<32x128xf32>
    %c0_61 = arith.constant 0 : index
    %c7 = arith.constant 7 : index
    %c0_62 = arith.constant 0 : index
    %62 = vector.load %arg7[%c0_61, %c7, %c0_62] : memref<2x26x128xf32, #tpu.memory_space<vmem>>, vector<2x16x128xf32>
    %63 = vector.shape_cast %62 : vector<2x16x128xf32> to vector<32x128xf32>
    %c7_63 = arith.constant 7 : index
    %c0_64 = arith.constant 0 : index
    %c0_65 = arith.constant 0 : index
    %64 = vector.load %arg3[%c7_63, %c0_64, %c0_65] : memref<11x128x128xf32, #tpu.memory_space<vmem>>, vector<1x128x128xf32>
    %65 = vector.shape_cast %64 : vector<1x128x128xf32> to vector<128x128xf32>
    %cst_66 = arith.constant dense<0.000000e+00> : vector<32x128xf32>
    %66 = tpu.matmul %63, %65, %cst_66 {dimension_numbers = #tpu.dot_dimension_numbers<[1], [0], [0], [1], [0, 0, 1, 1], [], []>} : vector<32x128xf32>, vector<128x128xf32>, vector<32x128xf32> -> vector<32x128xf32>
    %67 = arith.addf %61, %66 : vector<32x128xf32>
    %c0_67 = arith.constant 0 : index
    %c8 = arith.constant 8 : index
    %c0_68 = arith.constant 0 : index
    %68 = vector.load %arg7[%c0_67, %c8, %c0_68] : memref<2x26x128xf32, #tpu.memory_space<vmem>>, vector<2x16x128xf32>
    %69 = vector.shape_cast %68 : vector<2x16x128xf32> to vector<32x128xf32>
    %c8_69 = arith.constant 8 : index
    %c0_70 = arith.constant 0 : index
    %c0_71 = arith.constant 0 : index
    %70 = vector.load %arg3[%c8_69, %c0_70, %c0_71] : memref<11x128x128xf32, #tpu.memory_space<vmem>>, vector<1x128x128xf32>
    %71 = vector.shape_cast %70 : vector<1x128x128xf32> to vector<128x128xf32>
    %cst_72 = arith.constant dense<0.000000e+00> : vector<32x128xf32>
    %72 = tpu.matmul %69, %71, %cst_72 {dimension_numbers = #tpu.dot_dimension_numbers<[1], [0], [0], [1], [0, 0, 1, 1], [], []>} : vector<32x128xf32>, vector<128x128xf32>, vector<32x128xf32> -> vector<32x128xf32>
    %73 = arith.addf %67, %72 : vector<32x128xf32>
    %c0_73 = arith.constant 0 : index
    %c9 = arith.constant 9 : index
    %c0_74 = arith.constant 0 : index
    %74 = vector.load %arg7[%c0_73, %c9, %c0_74] : memref<2x26x128xf32, #tpu.memory_space<vmem>>, vector<2x16x128xf32>
    %75 = vector.shape_cast %74 : vector<2x16x128xf32> to vector<32x128xf32>
    %c9_75 = arith.constant 9 : index
    %c0_76 = arith.constant 0 : index
    %c0_77 = arith.constant 0 : index
    %76 = vector.load %arg3[%c9_75, %c0_76, %c0_77] : memref<11x128x128xf32, #tpu.memory_space<vmem>>, vector<1x128x128xf32>
    %77 = vector.shape_cast %76 : vector<1x128x128xf32> to vector<128x128xf32>
    %cst_78 = arith.constant dense<0.000000e+00> : vector<32x128xf32>
    %78 = tpu.matmul %75, %77, %cst_78 {dimension_numbers = #tpu.dot_dimension_numbers<[1], [0], [0], [1], [0, 0, 1, 1], [], []>} : vector<32x128xf32>, vector<128x128xf32>, vector<32x128xf32> -> vector<32x128xf32>
    %79 = arith.addf %73, %78 : vector<32x128xf32>
    %c0_79 = arith.constant 0 : index
    %c10 = arith.constant 10 : index
    %c0_80 = arith.constant 0 : index
    %80 = vector.load %arg7[%c0_79, %c10, %c0_80] : memref<2x26x128xf32, #tpu.memory_space<vmem>>, vector<2x16x128xf32>
    %81 = vector.shape_cast %80 : vector<2x16x128xf32> to vector<32x128xf32>
    %c10_81 = arith.constant 10 : index
    %c0_82 = arith.constant 0 : index
    %c0_83 = arith.constant 0 : index
    %82 = vector.load %arg3[%c10_81, %c0_82, %c0_83] : memref<11x128x128xf32, #tpu.memory_space<vmem>>, vector<1x128x128xf32>
    %83 = vector.shape_cast %82 : vector<1x128x128xf32> to vector<128x128xf32>
    %cst_84 = arith.constant dense<0.000000e+00> : vector<32x128xf32>
    %84 = tpu.matmul %81, %83, %cst_84 {dimension_numbers = #tpu.dot_dimension_numbers<[1], [0], [0], [1], [0, 0, 1, 1], [], []>} : vector<32x128xf32>, vector<128x128xf32>, vector<32x128xf32> -> vector<32x128xf32>
    %85 = arith.addf %79, %84 : vector<32x128xf32>
    %c0_85 = arith.constant 0 : index
    %c0_86 = arith.constant 0 : index
    %86 = vector.load %arg6[%c0_85, %c0_86] : memref<2x128xf32, #tpu.memory_space<vmem>>, vector<1x128xf32>
    %cst_87 = arith.constant dense<0.000000e+00> : vector<128xf32>
    %87 = vector.multi_reduction <add>, %85, %cst_87 [0] : vector<32x128xf32> to vector<128xf32>
    %88 = vector.shape_cast %87 : vector<128xf32> to vector<1x128xf32>
    %89 = arith.addf %86, %88 : vector<1x128xf32>
    %c0_88 = arith.constant 0 : index
    %c0_89 = arith.constant 0 : index
    %90 = vector.load %arg6[%c0_88, %c0_89] : memref<2x128xf32, #tpu.memory_space<vmem>>, vector<1x128xf32>
    tpu.vector_store %arg6[%c0_88, %c0_89], %89 {strides = array<i32>} : memref<2x128xf32, #tpu.memory_space<vmem>>, vector<1x128xf32>,
    %c1_90 = arith.constant 1 : index
    %c0_91 = arith.constant 0 : index
    %91 = vector.load %arg6[%c1_90, %c0_91] : memref<2x128xf32, #tpu.memory_space<vmem>>, vector<1x128xf32>
    %92 = arith.mulf %85, %85 : vector<32x128xf32>
    %cst_92 = arith.constant dense<0.000000e+00> : vector<128xf32>
    %93 = vector.multi_reduction <add>, %92, %cst_92 [0] : vector<32x128xf32> to vector<128xf32>
    %94 = vector.shape_cast %93 : vector<128xf32> to vector<1x128xf32>
    %95 = arith.addf %91, %94 : vector<1x128xf32>
    %c1_93 = arith.constant 1 : index
    %c0_94 = arith.constant 0 : index
    %96 = vector.load %arg6[%c1_93, %c0_94] : memref<2x128xf32, #tpu.memory_space<vmem>>, vector<1x128xf32>
    tpu.vector_store %arg6[%c1_93, %c0_94], %95 {strides = array<i32>} : memref<2x128xf32, #tpu.memory_space<vmem>>, vector<1x128xf32>,
    %cst_95 = arith.constant 0.000000e+00 : f32
    %97 = vector.broadcast %cst_95 : f32 to vector<2x5x128xf32>
    %c0_96 = arith.constant 0 : index
    %c0_97 = arith.constant 0 : index
    %c0_98 = arith.constant 0 : index
    %98 = vector.load %arg5[%c0_96, %c0_97, %c0_98] : memref<2x26x128xf32, #tpu.memory_space<vmem>>, vector<2x5x128xf32>
    tpu.vector_store %arg5[%c0_96, %c0_97, %c0_98], %97 {strides = array<i32>} : memref<2x26x128xf32, #tpu.memory_space<vmem>>, vector<2x5x128xf32>,
    %cst_99 = arith.constant 0.000000e+00 : f32
    %99 = vector.broadcast %cst_99 : f32 to vector<2x5x128xf32>
    %c0_100 = arith.constant 0 : index
    %c21_101 = arith.constant 21 : index
    %c0_102 = arith.constant 0 : index
    %100 = vector.load %arg5[%c0_100, %c21_101, %c0_102] : memref<2x26x128xf32, #tpu.memory_space<vmem>>, vector<2x5x128xf32>
    tpu.vector_store %arg5[%c0_100, %c21_101, %c0_102], %99 {strides = array<i32>} : memref<2x26x128xf32, #tpu.memory_space<vmem>>, vector<2x5x128xf32>,
    %101 = vector.shape_cast %85 : vector<32x128xf32> to vector<2x16x128xf32>
    %c0_103 = arith.constant 0 : index
    %c5_104 = arith.constant 5 : index
    %c0_105 = arith.constant 0 : index
    %102 = vector.load %arg5[%c0_103, %c5_104, %c0_105] : memref<2x26x128xf32, #tpu.memory_space<vmem>>, vector<2x16x128xf32>
    tpu.vector_store %arg5[%c0_103, %c5_104, %c0_105], %101 {strides = array<i32>} : memref<2x26x128xf32, #tpu.memory_space<vmem>>, vector<2x16x128xf32>,
    %c0_i32_106 = arith.constant 0 : i32
    %103 = arith.cmpi eq, %arg0, %c0_i32_106 : i32
    %104 = arith.extui %103 : i1 to i32
    %c0_i32_107 = arith.constant 0 : i32
    %105 = arith.cmpi ne, %104, %c0_i32_107 : i32
    scf.if %105 {
      %c0_108 = arith.constant 0 : index
      %c0_109 = arith.constant 0 : index
      %106 = vector.load %arg6[%c0_108, %c0_109] : memref<2x128xf32, #tpu.memory_space<vmem>>, vector<1x128xf32>
      %cst_110 = arith.constant 3.125000e-02 : f32
      %107 = vector.broadcast %cst_110 : f32 to vector<1x128xf32>
      %108 = arith.mulf %106, %107 : vector<1x128xf32>
      %c1_111 = arith.constant 1 : index
      %c0_112 = arith.constant 0 : index
      %109 = vector.load %arg6[%c1_111, %c0_112] : memref<2x128xf32, #tpu.memory_space<vmem>>, vector<1x128xf32>
      %cst_113 = arith.constant 3.125000e-02 : f32
      %110 = vector.broadcast %cst_113 : f32 to vector<1x128xf32>
      %111 = arith.mulf %109, %110 : vector<1x128xf32>
      %112 = arith.mulf %108, %108 : vector<1x128xf32>
      %113 = arith.subf %111, %112 : vector<1x128xf32>
      %cst_114 = arith.constant 0.000000e+00 : f32
      %114 = vector.broadcast %cst_114 : f32 to vector<1x128xf32>
      %115 = arith.maximumf %113, %114 : vector<1x128xf32>
      %c0_115 = arith.constant 0 : index
      %c0_116 = arith.constant 0 : index
      %116 = vector.load %arg4[%c0_115, %c0_116] : memref<2x128xf32, #tpu.memory_space<vmem>>, vector<1x128xf32>
      %cst_117 = arith.constant 9.99999974E-6 : f32
      %117 = vector.broadcast %cst_117 : f32 to vector<1x128xf32>
      %118 = arith.addf %115, %117 : vector<1x128xf32>
      %119 = math.rsqrt %118 : vector<1x128xf32>
      %120 = arith.mulf %116, %119 : vector<1x128xf32>
      %c1_118 = arith.constant 1 : index
      %c0_119 = arith.constant 0 : index
      %121 = vector.load %arg4[%c1_118, %c0_119] : memref<2x128xf32, #tpu.memory_space<vmem>>, vector<1x128xf32>
      %122 = arith.mulf %108, %120 : vector<1x128xf32>
      %123 = arith.subf %121, %122 : vector<1x128xf32>
      %c0_120 = arith.constant 0 : index
      %c0_121 = arith.constant 0 : index
      %124 = vector.load %arg6[%c0_120, %c0_121] : memref<2x128xf32, #tpu.memory_space<vmem>>, vector<1x128xf32>
      tpu.vector_store %arg6[%c0_120, %c0_121], %120 {strides = array<i32>} : memref<2x128xf32, #tpu.memory_space<vmem>>, vector<1x128xf32>,
      %c1_122 = arith.constant 1 : index
      %c0_123 = arith.constant 0 : index
      %125 = vector.load %arg6[%c1_122, %c0_123] : memref<2x128xf32, #tpu.memory_space<vmem>>, vector<1x128xf32>
      tpu.vector_store %arg6[%c1_122, %c0_123], %123 {strides = array<i32>} : memref<2x128xf32, #tpu.memory_space<vmem>>, vector<1x128xf32>,
    } else {
    }
    return
  }
  func.func @transform_0(%arg0: i32) -> (i32, i32, i32) {
    %c0_i32 = arith.constant 0 : i32
    %c0_i32_0 = arith.constant 0 : i32
    %c0_i32_1 = arith.constant 0 : i32
    return %arg0, %c0_i32, %c0_i32_0 : i32, i32, i32
  }
  func.func @transform_1(%arg0: i32) -> (i32, i32) {
    %c0_i32 = arith.constant 0 : i32
    %c0_i32_0 = arith.constant 0 : i32
    %c0_i32_1 = arith.constant 0 : i32
    return %c0_i32, %c0_i32_0 : i32, i32
  }
  func.func @transform_2(%arg0: i32) -> (i32, i32, i32) {
    %c0_i32 = arith.constant 0 : i32
    %c0_i32_0 = arith.constant 0 : i32
    %c0_i32_1 = arith.constant 0 : i32
    %c0_i32_2 = arith.constant 0 : i32
    return %c0_i32, %c0_i32_0, %c0_i32_1 : i32, i32, i32
  }
  func.func @transform_3(%arg0: i32) -> (i32, i32) {
    %c0_i32 = arith.constant 0 : i32
    %c0_i32_0 = arith.constant 0 : i32
    %c0_i32_1 = arith.constant 0 : i32
    return %c0_i32, %c0_i32_0 : i32, i32
  }
  func.func @transform_4(%arg0: i32) -> (i32, i32, i32) {
    %c0_i32 = arith.constant 0 : i32
    %c0_i32_0 = arith.constant 0 : i32
    %c0_i32_1 = arith.constant 0 : i32
    return %arg0, %c0_i32, %c0_i32_0 : i32, i32, i32
  }
  func.func @transform_5(%arg0: i32) -> (i32, i32) {
    %c0_i32 = arith.constant 0 : i32
    %c0_i32_0 = arith.constant 0 : i32
    %c0_i32_1 = arith.constant 0 : i32
    return %c0_i32, %c0_i32_0 : i32, i32
  }
}

module attributes {stable_mosaic.version = 11 : i64} {
  func.func @conv_bn_layer_kernel(%arg0: i32, %arg1: memref<2x26x128xf32, #tpu.memory_space<vmem>>, %arg2: memref<2x128xf32, #tpu.memory_space<vmem>>, %arg3: memref<11x128x128xf32, #tpu.memory_space<vmem>>, %arg4: memref<2x128xf32, #tpu.memory_space<vmem>>, %arg5: memref<2x26x128xf32, #tpu.memory_space<vmem>>, %arg6: memref<2x128xf32, #tpu.memory_space<vmem>>, %arg7: memref<2x26x128xf32, #tpu.memory_space<vmem>>) attributes {dimension_semantics = [#tpu.dimension_semantics<arbitrary>], iteration_bounds = array<i64: 1>, scalar_prefetch = 0 : i64, scratch_operands = 1 : i64, tpu.core_type = #tpu.core_type<tc>, window_params = [{transform_indices = @transform_0, window_bounds = array<i64: 2, 26, 128>}, {pipeline_mode = #tpu.pipeline_mode<synchronous>, transform_indices = @transform_1, window_bounds = array<i64: 2, 128>}, {pipeline_mode = #tpu.pipeline_mode<synchronous>, transform_indices = @transform_2, window_bounds = array<i64: 11, 128, 128>}, {pipeline_mode = #tpu.pipeline_mode<synchronous>, transform_indices = @transform_3, window_bounds = array<i64: 2, 128>}, {transform_indices = @transform_4, window_bounds = array<i64: 2, 26, 128>}, {pipeline_mode = #tpu.pipeline_mode<synchronous>, transform_indices = @transform_5, window_bounds = array<i64: 2, 128>}]} {
    %c0_i32 = arith.constant 0 : i32
    %0 = arith.cmpi eq, %arg0, %c0_i32 : i32
    %1 = arith.extui %0 : i1 to i32
    %c0_i32_0 = arith.constant 0 : i32
    %2 = arith.cmpi ne, %1, %c0_i32_0 : i32
    scf.if %2 {
      %cst_107 = arith.constant 0.000000e+00 : f32
      %104 = vector.broadcast %cst_107 : f32 to vector<2x128xf32>
      %c0_108 = arith.constant 0 : index
      %c0_109 = arith.constant 0 : index
      %105 = vector.load %arg6[%c0_108, %c0_109] : memref<2x128xf32, #tpu.memory_space<vmem>>, vector<2x128xf32>
      tpu.vector_store %arg6[%c0_108, %c0_109], %104 {strides = array<i32>} : memref<2x128xf32, #tpu.memory_space<vmem>>, vector<2x128xf32>,
    } else {
    }
    %c0 = arith.constant 0 : index
    %c5 = arith.constant 5 : index
    %c0_1 = arith.constant 0 : index
    %3 = vector.load %arg1[%c0, %c5, %c0_1] : memref<2x26x128xf32, #tpu.memory_space<vmem>>, vector<2x16x128xf32>
    %c0_2 = arith.constant 0 : index
    %c0_3 = arith.constant 0 : index
    %4 = vector.load %arg2[%c0_2, %c0_3] : memref<2x128xf32, #tpu.memory_space<vmem>>, vector<1x128xf32>
    %5 = vector.shape_cast %4 : vector<1x128xf32> to vector<1x1x128xf32>
    %6 = vector.broadcast %5 : vector<1x1x128xf32> to vector<2x16x128xf32>
    %7 = arith.mulf %3, %6 : vector<2x16x128xf32>
    %c1 = arith.constant 1 : index
    %c0_4 = arith.constant 0 : index
    %8 = vector.load %arg2[%c1, %c0_4] : memref<2x128xf32, #tpu.memory_space<vmem>>, vector<1x128xf32>
    %9 = vector.shape_cast %8 : vector<1x128xf32> to vector<1x1x128xf32>
    %10 = vector.broadcast %9 : vector<1x1x128xf32> to vector<2x16x128xf32>
    %11 = arith.addf %7, %10 : vector<2x16x128xf32>
    %cst = arith.constant 0.000000e+00 : f32
    %12 = vector.broadcast %cst : f32 to vector<2x5x128xf32>
    %c0_5 = arith.constant 0 : index
    %c0_6 = arith.constant 0 : index
    %c0_7 = arith.constant 0 : index
    %13 = vector.load %arg7[%c0_5, %c0_6, %c0_7] : memref<2x26x128xf32, #tpu.memory_space<vmem>>, vector<2x5x128xf32>
    tpu.vector_store %arg7[%c0_5, %c0_6, %c0_7], %12 {strides = array<i32>} : memref<2x26x128xf32, #tpu.memory_space<vmem>>, vector<2x5x128xf32>,
    %cst_8 = arith.constant 0.000000e+00 : f32
    %14 = vector.broadcast %cst_8 : f32 to vector<2x5x128xf32>
    %c0_9 = arith.constant 0 : index
    %c21 = arith.constant 21 : index
    %c0_10 = arith.constant 0 : index
    %15 = vector.load %arg7[%c0_9, %c21, %c0_10] : memref<2x26x128xf32, #tpu.memory_space<vmem>>, vector<2x5x128xf32>
    tpu.vector_store %arg7[%c0_9, %c21, %c0_10], %14 {strides = array<i32>} : memref<2x26x128xf32, #tpu.memory_space<vmem>>, vector<2x5x128xf32>,
    %c0_11 = arith.constant 0 : index
    %c5_12 = arith.constant 5 : index
    %c0_13 = arith.constant 0 : index
    %16 = vector.load %arg7[%c0_11, %c5_12, %c0_13] : memref<2x26x128xf32, #tpu.memory_space<vmem>>, vector<2x16x128xf32>
    tpu.vector_store %arg7[%c0_11, %c5_12, %c0_13], %11 {strides = array<i32>} : memref<2x26x128xf32, #tpu.memory_space<vmem>>, vector<2x16x128xf32>,
    %cst_14 = arith.constant 0.000000e+00 : f32
    %17 = vector.broadcast %cst_14 : f32 to vector<32x128xf32>
    %c0_15 = arith.constant 0 : index
    %c0_16 = arith.constant 0 : index
    %c0_17 = arith.constant 0 : index
    %18 = vector.load %arg7[%c0_15, %c0_16, %c0_17] : memref<2x26x128xf32, #tpu.memory_space<vmem>>, vector<2x16x128xf32>
    %19 = vector.shape_cast %18 : vector<2x16x128xf32> to vector<32x128xf32>
    %c0_18 = arith.constant 0 : index
    %c0_19 = arith.constant 0 : index
    %c0_20 = arith.constant 0 : index
    %20 = vector.load %arg3[%c0_18, %c0_19, %c0_20] : memref<11x128x128xf32, #tpu.memory_space<vmem>>, vector<1x128x128xf32>
    %21 = vector.shape_cast %20 : vector<1x128x128xf32> to vector<128x128xf32>
    %cst_21 = arith.constant dense<0.000000e+00> : vector<32x128xf32>
    %22 = tpu.matmul %19, %21, %cst_21 {dimension_numbers = #tpu.dot_dimension_numbers<[1], [0], [0], [1], [0, 0, 1, 1], [], []>} : vector<32x128xf32>, vector<128x128xf32>, vector<32x128xf32> -> vector<32x128xf32>
    %23 = arith.addf %17, %22 : vector<32x128xf32>
    %c0_22 = arith.constant 0 : index
    %c1_23 = arith.constant 1 : index
    %c0_24 = arith.constant 0 : index
    %24 = vector.load %arg7[%c0_22, %c1_23, %c0_24] : memref<2x26x128xf32, #tpu.memory_space<vmem>>, vector<2x16x128xf32>
    %25 = vector.shape_cast %24 : vector<2x16x128xf32> to vector<32x128xf32>
    %c1_25 = arith.constant 1 : index
    %c0_26 = arith.constant 0 : index
    %c0_27 = arith.constant 0 : index
    %26 = vector.load %arg3[%c1_25, %c0_26, %c0_27] : memref<11x128x128xf32, #tpu.memory_space<vmem>>, vector<1x128x128xf32>
    %27 = vector.shape_cast %26 : vector<1x128x128xf32> to vector<128x128xf32>
    %cst_28 = arith.constant dense<0.000000e+00> : vector<32x128xf32>
    %28 = tpu.matmul %25, %27, %cst_28 {dimension_numbers = #tpu.dot_dimension_numbers<[1], [0], [0], [1], [0, 0, 1, 1], [], []>} : vector<32x128xf32>, vector<128x128xf32>, vector<32x128xf32> -> vector<32x128xf32>
    %29 = arith.addf %23, %28 : vector<32x128xf32>
    %c0_29 = arith.constant 0 : index
    %c2 = arith.constant 2 : index
    %c0_30 = arith.constant 0 : index
    %30 = vector.load %arg7[%c0_29, %c2, %c0_30] : memref<2x26x128xf32, #tpu.memory_space<vmem>>, vector<2x16x128xf32>
    %31 = vector.shape_cast %30 : vector<2x16x128xf32> to vector<32x128xf32>
    %c2_31 = arith.constant 2 : index
    %c0_32 = arith.constant 0 : index
    %c0_33 = arith.constant 0 : index
    %32 = vector.load %arg3[%c2_31, %c0_32, %c0_33] : memref<11x128x128xf32, #tpu.memory_space<vmem>>, vector<1x128x128xf32>
    %33 = vector.shape_cast %32 : vector<1x128x128xf32> to vector<128x128xf32>
    %cst_34 = arith.constant dense<0.000000e+00> : vector<32x128xf32>
    %34 = tpu.matmul %31, %33, %cst_34 {dimension_numbers = #tpu.dot_dimension_numbers<[1], [0], [0], [1], [0, 0, 1, 1], [], []>} : vector<32x128xf32>, vector<128x128xf32>, vector<32x128xf32> -> vector<32x128xf32>
    %35 = arith.addf %29, %34 : vector<32x128xf32>
    %c0_35 = arith.constant 0 : index
    %c3 = arith.constant 3 : index
    %c0_36 = arith.constant 0 : index
    %36 = vector.load %arg7[%c0_35, %c3, %c0_36] : memref<2x26x128xf32, #tpu.memory_space<vmem>>, vector<2x16x128xf32>
    %37 = vector.shape_cast %36 : vector<2x16x128xf32> to vector<32x128xf32>
    %c3_37 = arith.constant 3 : index
    %c0_38 = arith.constant 0 : index
    %c0_39 = arith.constant 0 : index
    %38 = vector.load %arg3[%c3_37, %c0_38, %c0_39] : memref<11x128x128xf32, #tpu.memory_space<vmem>>, vector<1x128x128xf32>
    %39 = vector.shape_cast %38 : vector<1x128x128xf32> to vector<128x128xf32>
    %cst_40 = arith.constant dense<0.000000e+00> : vector<32x128xf32>
    %40 = tpu.matmul %37, %39, %cst_40 {dimension_numbers = #tpu.dot_dimension_numbers<[1], [0], [0], [1], [0, 0, 1, 1], [], []>} : vector<32x128xf32>, vector<128x128xf32>, vector<32x128xf32> -> vector<32x128xf32>
    %41 = arith.addf %35, %40 : vector<32x128xf32>
    %c0_41 = arith.constant 0 : index
    %c4 = arith.constant 4 : index
    %c0_42 = arith.constant 0 : index
    %42 = vector.load %arg7[%c0_41, %c4, %c0_42] : memref<2x26x128xf32, #tpu.memory_space<vmem>>, vector<2x16x128xf32>
    %43 = vector.shape_cast %42 : vector<2x16x128xf32> to vector<32x128xf32>
    %c4_43 = arith.constant 4 : index
    %c0_44 = arith.constant 0 : index
    %c0_45 = arith.constant 0 : index
    %44 = vector.load %arg3[%c4_43, %c0_44, %c0_45] : memref<11x128x128xf32, #tpu.memory_space<vmem>>, vector<1x128x128xf32>
    %45 = vector.shape_cast %44 : vector<1x128x128xf32> to vector<128x128xf32>
    %cst_46 = arith.constant dense<0.000000e+00> : vector<32x128xf32>
    %46 = tpu.matmul %43, %45, %cst_46 {dimension_numbers = #tpu.dot_dimension_numbers<[1], [0], [0], [1], [0, 0, 1, 1], [], []>} : vector<32x128xf32>, vector<128x128xf32>, vector<32x128xf32> -> vector<32x128xf32>
    %47 = arith.addf %41, %46 : vector<32x128xf32>
    %c0_47 = arith.constant 0 : index
    %c5_48 = arith.constant 5 : index
    %c0_49 = arith.constant 0 : index
    %48 = vector.load %arg7[%c0_47, %c5_48, %c0_49] : memref<2x26x128xf32, #tpu.memory_space<vmem>>, vector<2x16x128xf32>
    %49 = vector.shape_cast %48 : vector<2x16x128xf32> to vector<32x128xf32>
    %c5_50 = arith.constant 5 : index
    %c0_51 = arith.constant 0 : index
    %c0_52 = arith.constant 0 : index
    %50 = vector.load %arg3[%c5_50, %c0_51, %c0_52] : memref<11x128x128xf32, #tpu.memory_space<vmem>>, vector<1x128x128xf32>
    %51 = vector.shape_cast %50 : vector<1x128x128xf32> to vector<128x128xf32>
    %cst_53 = arith.constant dense<0.000000e+00> : vector<32x128xf32>
    %52 = tpu.matmul %49, %51, %cst_53 {dimension_numbers = #tpu.dot_dimension_numbers<[1], [0], [0], [1], [0, 0, 1, 1], [], []>} : vector<32x128xf32>, vector<128x128xf32>, vector<32x128xf32> -> vector<32x128xf32>
    %53 = arith.addf %47, %52 : vector<32x128xf32>
    %c0_54 = arith.constant 0 : index
    %c6 = arith.constant 6 : index
    %c0_55 = arith.constant 0 : index
    %54 = vector.load %arg7[%c0_54, %c6, %c0_55] : memref<2x26x128xf32, #tpu.memory_space<vmem>>, vector<2x16x128xf32>
    %55 = vector.shape_cast %54 : vector<2x16x128xf32> to vector<32x128xf32>
    %c6_56 = arith.constant 6 : index
    %c0_57 = arith.constant 0 : index
    %c0_58 = arith.constant 0 : index
    %56 = vector.load %arg3[%c6_56, %c0_57, %c0_58] : memref<11x128x128xf32, #tpu.memory_space<vmem>>, vector<1x128x128xf32>
    %57 = vector.shape_cast %56 : vector<1x128x128xf32> to vector<128x128xf32>
    %cst_59 = arith.constant dense<0.000000e+00> : vector<32x128xf32>
    %58 = tpu.matmul %55, %57, %cst_59 {dimension_numbers = #tpu.dot_dimension_numbers<[1], [0], [0], [1], [0, 0, 1, 1], [], []>} : vector<32x128xf32>, vector<128x128xf32>, vector<32x128xf32> -> vector<32x128xf32>
    %59 = arith.addf %53, %58 : vector<32x128xf32>
    %c0_60 = arith.constant 0 : index
    %c7 = arith.constant 7 : index
    %c0_61 = arith.constant 0 : index
    %60 = vector.load %arg7[%c0_60, %c7, %c0_61] : memref<2x26x128xf32, #tpu.memory_space<vmem>>, vector<2x16x128xf32>
    %61 = vector.shape_cast %60 : vector<2x16x128xf32> to vector<32x128xf32>
    %c7_62 = arith.constant 7 : index
    %c0_63 = arith.constant 0 : index
    %c0_64 = arith.constant 0 : index
    %62 = vector.load %arg3[%c7_62, %c0_63, %c0_64] : memref<11x128x128xf32, #tpu.memory_space<vmem>>, vector<1x128x128xf32>
    %63 = vector.shape_cast %62 : vector<1x128x128xf32> to vector<128x128xf32>
    %cst_65 = arith.constant dense<0.000000e+00> : vector<32x128xf32>
    %64 = tpu.matmul %61, %63, %cst_65 {dimension_numbers = #tpu.dot_dimension_numbers<[1], [0], [0], [1], [0, 0, 1, 1], [], []>} : vector<32x128xf32>, vector<128x128xf32>, vector<32x128xf32> -> vector<32x128xf32>
    %65 = arith.addf %59, %64 : vector<32x128xf32>
    %c0_66 = arith.constant 0 : index
    %c8 = arith.constant 8 : index
    %c0_67 = arith.constant 0 : index
    %66 = vector.load %arg7[%c0_66, %c8, %c0_67] : memref<2x26x128xf32, #tpu.memory_space<vmem>>, vector<2x16x128xf32>
    %67 = vector.shape_cast %66 : vector<2x16x128xf32> to vector<32x128xf32>
    %c8_68 = arith.constant 8 : index
    %c0_69 = arith.constant 0 : index
    %c0_70 = arith.constant 0 : index
    %68 = vector.load %arg3[%c8_68, %c0_69, %c0_70] : memref<11x128x128xf32, #tpu.memory_space<vmem>>, vector<1x128x128xf32>
    %69 = vector.shape_cast %68 : vector<1x128x128xf32> to vector<128x128xf32>
    %cst_71 = arith.constant dense<0.000000e+00> : vector<32x128xf32>
    %70 = tpu.matmul %67, %69, %cst_71 {dimension_numbers = #tpu.dot_dimension_numbers<[1], [0], [0], [1], [0, 0, 1, 1], [], []>} : vector<32x128xf32>, vector<128x128xf32>, vector<32x128xf32> -> vector<32x128xf32>
    %71 = arith.addf %65, %70 : vector<32x128xf32>
    %c0_72 = arith.constant 0 : index
    %c9 = arith.constant 9 : index
    %c0_73 = arith.constant 0 : index
    %72 = vector.load %arg7[%c0_72, %c9, %c0_73] : memref<2x26x128xf32, #tpu.memory_space<vmem>>, vector<2x16x128xf32>
    %73 = vector.shape_cast %72 : vector<2x16x128xf32> to vector<32x128xf32>
    %c9_74 = arith.constant 9 : index
    %c0_75 = arith.constant 0 : index
    %c0_76 = arith.constant 0 : index
    %74 = vector.load %arg3[%c9_74, %c0_75, %c0_76] : memref<11x128x128xf32, #tpu.memory_space<vmem>>, vector<1x128x128xf32>
    %75 = vector.shape_cast %74 : vector<1x128x128xf32> to vector<128x128xf32>
    %cst_77 = arith.constant dense<0.000000e+00> : vector<32x128xf32>
    %76 = tpu.matmul %73, %75, %cst_77 {dimension_numbers = #tpu.dot_dimension_numbers<[1], [0], [0], [1], [0, 0, 1, 1], [], []>} : vector<32x128xf32>, vector<128x128xf32>, vector<32x128xf32> -> vector<32x128xf32>
    %77 = arith.addf %71, %76 : vector<32x128xf32>
    %c0_78 = arith.constant 0 : index
    %c10 = arith.constant 10 : index
    %c0_79 = arith.constant 0 : index
    %78 = vector.load %arg7[%c0_78, %c10, %c0_79] : memref<2x26x128xf32, #tpu.memory_space<vmem>>, vector<2x16x128xf32>
    %79 = vector.shape_cast %78 : vector<2x16x128xf32> to vector<32x128xf32>
    %c10_80 = arith.constant 10 : index
    %c0_81 = arith.constant 0 : index
    %c0_82 = arith.constant 0 : index
    %80 = vector.load %arg3[%c10_80, %c0_81, %c0_82] : memref<11x128x128xf32, #tpu.memory_space<vmem>>, vector<1x128x128xf32>
    %81 = vector.shape_cast %80 : vector<1x128x128xf32> to vector<128x128xf32>
    %cst_83 = arith.constant dense<0.000000e+00> : vector<32x128xf32>
    %82 = tpu.matmul %79, %81, %cst_83 {dimension_numbers = #tpu.dot_dimension_numbers<[1], [0], [0], [1], [0, 0, 1, 1], [], []>} : vector<32x128xf32>, vector<128x128xf32>, vector<32x128xf32> -> vector<32x128xf32>
    %83 = arith.addf %77, %82 : vector<32x128xf32>
    %c0_84 = arith.constant 0 : index
    %c0_85 = arith.constant 0 : index
    %84 = vector.load %arg6[%c0_84, %c0_85] : memref<2x128xf32, #tpu.memory_space<vmem>>, vector<1x128xf32>
    %cst_86 = arith.constant dense<0.000000e+00> : vector<128xf32>
    %85 = vector.multi_reduction <add>, %83, %cst_86 [0] : vector<32x128xf32> to vector<128xf32>
    %86 = vector.shape_cast %85 : vector<128xf32> to vector<1x128xf32>
    %87 = arith.addf %84, %86 : vector<1x128xf32>
    %c0_87 = arith.constant 0 : index
    %c0_88 = arith.constant 0 : index
    %88 = vector.load %arg6[%c0_87, %c0_88] : memref<2x128xf32, #tpu.memory_space<vmem>>, vector<1x128xf32>
    tpu.vector_store %arg6[%c0_87, %c0_88], %87 {strides = array<i32>} : memref<2x128xf32, #tpu.memory_space<vmem>>, vector<1x128xf32>,
    %c1_89 = arith.constant 1 : index
    %c0_90 = arith.constant 0 : index
    %89 = vector.load %arg6[%c1_89, %c0_90] : memref<2x128xf32, #tpu.memory_space<vmem>>, vector<1x128xf32>
    %90 = arith.mulf %83, %83 : vector<32x128xf32>
    %cst_91 = arith.constant dense<0.000000e+00> : vector<128xf32>
    %91 = vector.multi_reduction <add>, %90, %cst_91 [0] : vector<32x128xf32> to vector<128xf32>
    %92 = vector.shape_cast %91 : vector<128xf32> to vector<1x128xf32>
    %93 = arith.addf %89, %92 : vector<1x128xf32>
    %c1_92 = arith.constant 1 : index
    %c0_93 = arith.constant 0 : index
    %94 = vector.load %arg6[%c1_92, %c0_93] : memref<2x128xf32, #tpu.memory_space<vmem>>, vector<1x128xf32>
    tpu.vector_store %arg6[%c1_92, %c0_93], %93 {strides = array<i32>} : memref<2x128xf32, #tpu.memory_space<vmem>>, vector<1x128xf32>,
    %cst_94 = arith.constant 0.000000e+00 : f32
    %95 = vector.broadcast %cst_94 : f32 to vector<2x5x128xf32>
    %c0_95 = arith.constant 0 : index
    %c0_96 = arith.constant 0 : index
    %c0_97 = arith.constant 0 : index
    %96 = vector.load %arg5[%c0_95, %c0_96, %c0_97] : memref<2x26x128xf32, #tpu.memory_space<vmem>>, vector<2x5x128xf32>
    tpu.vector_store %arg5[%c0_95, %c0_96, %c0_97], %95 {strides = array<i32>} : memref<2x26x128xf32, #tpu.memory_space<vmem>>, vector<2x5x128xf32>,
    %cst_98 = arith.constant 0.000000e+00 : f32
    %97 = vector.broadcast %cst_98 : f32 to vector<2x5x128xf32>
    %c0_99 = arith.constant 0 : index
    %c21_100 = arith.constant 21 : index
    %c0_101 = arith.constant 0 : index
    %98 = vector.load %arg5[%c0_99, %c21_100, %c0_101] : memref<2x26x128xf32, #tpu.memory_space<vmem>>, vector<2x5x128xf32>
    tpu.vector_store %arg5[%c0_99, %c21_100, %c0_101], %97 {strides = array<i32>} : memref<2x26x128xf32, #tpu.memory_space<vmem>>, vector<2x5x128xf32>,
    %99 = vector.shape_cast %83 : vector<32x128xf32> to vector<2x16x128xf32>
    %c0_102 = arith.constant 0 : index
    %c5_103 = arith.constant 5 : index
    %c0_104 = arith.constant 0 : index
    %100 = vector.load %arg5[%c0_102, %c5_103, %c0_104] : memref<2x26x128xf32, #tpu.memory_space<vmem>>, vector<2x16x128xf32>
    tpu.vector_store %arg5[%c0_102, %c5_103, %c0_104], %99 {strides = array<i32>} : memref<2x26x128xf32, #tpu.memory_space<vmem>>, vector<2x16x128xf32>,
    %c0_i32_105 = arith.constant 0 : i32
    %101 = arith.cmpi eq, %arg0, %c0_i32_105 : i32
    %102 = arith.extui %101 : i1 to i32
    %c0_i32_106 = arith.constant 0 : i32
    %103 = arith.cmpi ne, %102, %c0_i32_106 : i32
    scf.if %103 {
      %c0_107 = arith.constant 0 : index
      %c0_108 = arith.constant 0 : index
      %104 = vector.load %arg6[%c0_107, %c0_108] : memref<2x128xf32, #tpu.memory_space<vmem>>, vector<1x128xf32>
      %cst_109 = arith.constant 3.125000e-02 : f32
      %105 = vector.broadcast %cst_109 : f32 to vector<1x128xf32>
      %106 = arith.mulf %104, %105 : vector<1x128xf32>
      %c1_110 = arith.constant 1 : index
      %c0_111 = arith.constant 0 : index
      %107 = vector.load %arg6[%c1_110, %c0_111] : memref<2x128xf32, #tpu.memory_space<vmem>>, vector<1x128xf32>
      %cst_112 = arith.constant 3.125000e-02 : f32
      %108 = vector.broadcast %cst_112 : f32 to vector<1x128xf32>
      %109 = arith.mulf %107, %108 : vector<1x128xf32>
      %110 = arith.mulf %106, %106 : vector<1x128xf32>
      %111 = arith.subf %109, %110 : vector<1x128xf32>
      %cst_113 = arith.constant 0.000000e+00 : f32
      %112 = vector.broadcast %cst_113 : f32 to vector<1x128xf32>
      %113 = arith.maximumf %111, %112 : vector<1x128xf32>
      %c0_114 = arith.constant 0 : index
      %c0_115 = arith.constant 0 : index
      %114 = vector.load %arg4[%c0_114, %c0_115] : memref<2x128xf32, #tpu.memory_space<vmem>>, vector<1x128xf32>
      %cst_116 = arith.constant 9.99999974E-6 : f32
      %115 = vector.broadcast %cst_116 : f32 to vector<1x128xf32>
      %116 = arith.addf %113, %115 : vector<1x128xf32>
      %117 = math.rsqrt %116 : vector<1x128xf32>
      %118 = arith.mulf %114, %117 : vector<1x128xf32>
      %c1_117 = arith.constant 1 : index
      %c0_118 = arith.constant 0 : index
      %119 = vector.load %arg4[%c1_117, %c0_118] : memref<2x128xf32, #tpu.memory_space<vmem>>, vector<1x128xf32>
      %120 = arith.mulf %106, %118 : vector<1x128xf32>
      %121 = arith.subf %119, %120 : vector<1x128xf32>
      %c0_119 = arith.constant 0 : index
      %c0_120 = arith.constant 0 : index
      %122 = vector.load %arg6[%c0_119, %c0_120] : memref<2x128xf32, #tpu.memory_space<vmem>>, vector<1x128xf32>
      tpu.vector_store %arg6[%c0_119, %c0_120], %118 {strides = array<i32>} : memref<2x128xf32, #tpu.memory_space<vmem>>, vector<1x128xf32>,
      %c1_121 = arith.constant 1 : index
      %c0_122 = arith.constant 0 : index
      %123 = vector.load %arg6[%c1_121, %c0_122] : memref<2x128xf32, #tpu.memory_space<vmem>>, vector<1x128xf32>
      tpu.vector_store %arg6[%c1_121, %c0_122], %121 {strides = array<i32>} : memref<2x128xf32, #tpu.memory_space<vmem>>, vector<1x128xf32>,
    } else {
    }
    return
  }
  func.func @transform_0(%arg0: i32) -> (i32, i32, i32) {
    %c0_i32 = arith.constant 0 : i32
    %c0_i32_0 = arith.constant 0 : i32
    %c0_i32_1 = arith.constant 0 : i32
    return %arg0, %c0_i32, %c0_i32_0 : i32, i32, i32
  }
  func.func @transform_1(%arg0: i32) -> (i32, i32) {
    %c0_i32 = arith.constant 0 : i32
    %c0_i32_0 = arith.constant 0 : i32
    %c0_i32_1 = arith.constant 0 : i32
    return %c0_i32, %c0_i32_0 : i32, i32
  }
  func.func @transform_2(%arg0: i32) -> (i32, i32, i32) {
    %c0_i32 = arith.constant 0 : i32
    %c0_i32_0 = arith.constant 0 : i32
    %c0_i32_1 = arith.constant 0 : i32
    %c0_i32_2 = arith.constant 0 : i32
    return %c0_i32, %c0_i32_0, %c0_i32_1 : i32, i32, i32
  }
  func.func @transform_3(%arg0: i32) -> (i32, i32) {
    %c0_i32 = arith.constant 0 : i32
    %c0_i32_0 = arith.constant 0 : i32
    %c0_i32_1 = arith.constant 0 : i32
    return %c0_i32, %c0_i32_0 : i32, i32
  }
  func.func @transform_4(%arg0: i32) -> (i32, i32, i32) {
    %c0_i32 = arith.constant 0 : i32
    %c0_i32_0 = arith.constant 0 : i32
    %c0_i32_1 = arith.constant 0 : i32
    return %arg0, %c0_i32, %c0_i32_0 : i32, i32, i32
  }
  func.func @transform_5(%arg0: i32) -> (i32, i32) {
    %c0_i32 = arith.constant 0 : i32
    %c0_i32_0 = arith.constant 0 : i32
    %c0_i32_1 = arith.constant 0 : i32
    return %c0_i32, %c0_i32_0 : i32, i32
  }
}

module attributes {stable_mosaic.version = 11 : i64} {
  func.func @bn_apply_kernel(%arg0: i32, %arg1: memref<2x26x128xf32, #tpu.memory_space<vmem>>, %arg2: memref<2x128xf32, #tpu.memory_space<vmem>>, %arg3: memref<2x16x128xf32, #tpu.memory_space<vmem>>) attributes {dimension_semantics = [#tpu.dimension_semantics<parallel>], iteration_bounds = array<i64: 1>, scalar_prefetch = 0 : i64, scratch_operands = 0 : i64, tpu.core_type = #tpu.core_type<tc>, window_params = [{transform_indices = @transform_0, window_bounds = array<i64: 2, 26, 128>}, {pipeline_mode = #tpu.pipeline_mode<synchronous>, transform_indices = @transform_1, window_bounds = array<i64: 2, 128>}, {transform_indices = @transform_2, window_bounds = array<i64: 2, 16, 128>}]} {
    %c0 = arith.constant 0 : index
    %c5 = arith.constant 5 : index
    %c0_0 = arith.constant 0 : index
    %0 = vector.load %arg1[%c0, %c5, %c0_0] : memref<2x26x128xf32, #tpu.memory_space<vmem>>, vector<2x16x128xf32>
    %c0_1 = arith.constant 0 : index
    %c0_2 = arith.constant 0 : index
    %1 = vector.load %arg2[%c0_1, %c0_2] : memref<2x128xf32, #tpu.memory_space<vmem>>, vector<1x128xf32>
    %2 = vector.shape_cast %1 : vector<1x128xf32> to vector<1x1x128xf32>
    %3 = vector.broadcast %2 : vector<1x1x128xf32> to vector<2x16x128xf32>
    %4 = arith.mulf %0, %3 : vector<2x16x128xf32>
    %c1 = arith.constant 1 : index
    %c0_3 = arith.constant 0 : index
    %5 = vector.load %arg2[%c1, %c0_3] : memref<2x128xf32, #tpu.memory_space<vmem>>, vector<1x128xf32>
    %6 = vector.shape_cast %5 : vector<1x128xf32> to vector<1x1x128xf32>
    %7 = vector.broadcast %6 : vector<1x1x128xf32> to vector<2x16x128xf32>
    %8 = arith.addf %4, %7 : vector<2x16x128xf32>
    %c0_4 = arith.constant 0 : index
    %c0_5 = arith.constant 0 : index
    %c0_6 = arith.constant 0 : index
    %9 = vector.load %arg3[%c0_4, %c0_5, %c0_6] : memref<2x16x128xf32, #tpu.memory_space<vmem>>, vector<2x16x128xf32>
    tpu.vector_store %arg3[%c0_4, %c0_5, %c0_6], %8 {strides = array<i32>} : memref<2x16x128xf32, #tpu.memory_space<vmem>>, vector<2x16x128xf32>,
    return
  }
  func.func @transform_0(%arg0: i32) -> (i32, i32, i32) {
    %c0_i32 = arith.constant 0 : i32
    %c0_i32_0 = arith.constant 0 : i32
    %c0_i32_1 = arith.constant 0 : i32
    return %arg0, %c0_i32, %c0_i32_0 : i32, i32, i32
  }
  func.func @transform_1(%arg0: i32) -> (i32, i32) {
    %c0_i32 = arith.constant 0 : i32
    %c0_i32_0 = arith.constant 0 : i32
    %c0_i32_1 = arith.constant 0 : i32
    return %c0_i32, %c0_i32_0 : i32, i32
  }
  func.func @transform_2(%arg0: i32) -> (i32, i32, i32) {
    %c0_i32 = arith.constant 0 : i32
    %c0_i32_0 = arith.constant 0 : i32
    %c0_i32_1 = arith.constant 0 : i32
    return %arg0, %c0_i32, %c0_i32_0 : i32, i32, i32
  }
}

</mosaic_0001>

<bundles_post_ra>
// kernel: encoder_forward.9
= control target key start
LH: loop header
LB: loop body
LE: loop exit
PB: predicated region body
PF: predicated region fallthrough
CT: control target
= control target key end

     0   :  { %s82_s0 = inlined_call_operand.vmem [shape: f32[2,26,128], index: 0, kind: input, shape index: {}]   ;;  %s83_s1 = inlined_call_operand.vmem [shape: f32[2,128], index: 1, kind: input, shape index: {}]   ;;  %s84_s2 = inlined_call_operand.vmem [shape: f32[2,16,128], index: 2, kind: output, shape index: {}]  }
   0x1   :  { %v11_v0 = vld [vmem:[%s82_s0 + $0x5] sm:$0xff]  ;;  %v35_v1 = vld [vmem:[%s83_s1] ss:$0 sm:$0xff]  ;;  %v36_v2 = vld [vmem:[%s83_s1 + $0x1] ss:$0 sm:$0xff] }
   0x2   :  { %v12_v3 = vld [vmem:[%s82_s0 + $0xd] sm:$0xff]  ;;  %v17_v4 = vmul.f32 %v35_v1, %v11_v0  ;;  %v13_v6 = vld [vmem:[%s82_s0 + $0x25] sm:$0xff] }
   0x3   :  { %v18_v5 = vmul.f32 %v35_v1, %v12_v3  ;;  %v14_v7 = vld [vmem:[%s82_s0 + $0x2d] sm:$0xff]  ;;  %v19_v8 = vmul.f32 %v35_v1, %v13_v6 }
   0x4   :  { %v20_v9 = vmul.f32 %v35_v1, %v14_v7  ;;  %v23_v10 = vadd.f32 %v36_v2, %v17_v4 }
   0x5   :  { %v24_v11 = vadd.f32 %v36_v2, %v18_v5  ;;  %v25_v12 = vadd.f32 %v36_v2, %v19_v8 }
   0x6   :  { %v26_v13 = vadd.f32 %v36_v2, %v20_v9  ;;  %27 = vst [vmem:[%s84_s2] sm:$0xff] %v23_v10 }
   0x7   :  { %28 = vst [vmem:[%s84_s2 + $0x8] sm:$0xff] %v24_v11 }
   0x8   :  { %29 = vst [vmem:[%s84_s2 + $0x10] sm:$0xff] %v25_v12 }
   0x9   :  { %30 = vst [vmem:[%s84_s2 + $0x18] sm:$0xff] %v26_v13 }

// kernel: encoder_forward.6
= control target key start
LH: loop header
LB: loop body
LE: loop exit
PB: predicated region body
PF: predicated region fallthrough
CT: control target
= control target key end

     0   :  { %11 = vsyncpa [#allocation4], 0  ;;  %s776_s21 = smov [#allocation3]   ;;  %s777_s23 = smov 128   ;;  %s952_s0 = inlined_call_operand.vmem [shape: f32[2,26,128], index: 0, kind: input, shape index: {}]   ;;  %s953_s1 = inlined_call_operand.vmem [shape: f32[2,128], index: 1, kind: input, shape index: {}]   ;;  %s954_s2 = inlined_call_operand.hbm [shape: f32[11,128,128], index: 2, kind: input, shape index: {}]   ;;  %s955_s3 = inlined_call_operand.vmem [shape: f32[2,128], index: 3, kind: input, shape index: {}]   ;;  %s956_s4 = inlined_call_operand.vmem [shape: f32[2,26,128], index: 4, kind: output, shape index: {0}]   ;;  %s957_s5 = inlined_call_operand.vmem [shape: f32[2,128], index: 5, kind: output, shape index: {1}]  }
   0x1   :  { %s20_s20 = sshll.u32 %s954_s2, 4  ;;  %s22_s22 = sshll.u32 %s776_s21, 4  ;;  %s21_s20 = int_to_ptr.hbm [resolvable:$true] %s20_s20  ;;  %s23_s22 = int_to_ptr.vmem [resolvable:$true] %s22_s22 }
   0x2   :  { %s778_s24 = smov 8  }
   0x3   :  { %28 = dma.hbm_to_vmem [thread:$0]  %s21_s20, 22528, %s23_s22, [#allocation4], %s777_s23, %s777_s23, %s778_s24  }
   0x4   :  { %774 = dma.done.wait [#allocation4], 22528  }
   0x5   :  { %775 = vsyncadd [#allocation4], 4294944768  ;;  %v779_v0 = vmov 0.0   ;;  %v108_v1 = vld [vmem:[#allocation3 + $0xf8] sm:$0xff]  ;;  %v107_v5 = vld [vmem:[#allocation3 + $0xf0] sm:$0xff] }
   0x6   :  { %60 = vst [vmem:[#allocation2] sm:$0x1f] %v779_v0  ;;  %v87_v2 = vld [vmem:[#allocation3 + $0x78] sm:$0xff]  ;;  %109 = vmatpush.msra.mxu0 %v108_v1  ;;  %v86_v6 = vld [vmem:[#allocation3 + $0x70] sm:$0xff]  ;;  %v106_v9 = vld [vmem:[#allocation3 + $0xe8] sm:$0xff] }
   0x7   :  { %681 = vst [vmem:[%s956_s4] sm:$0x1f] %v779_v0  ;;  %v187_v3 = vld [vmem:[#allocation3 + $0x178] sm:$0xff]  ;;  %138 = vmatpush.msra.mxu1 %v87_v2  ;;  %v186_v7 = vld [vmem:[#allocation3 + $0x170] sm:$0xff]  ;;  %v85_v10 = vld [vmem:[#allocation3 + $0x68] sm:$0xff] }
   0x8   :  { %682 = vst [vmem:[%s956_s4 + $0x20] sm:$0x1f] %v779_v0  ;;  %v241_v4 = vld [vmem:[#allocation3 + $0x1f8] sm:$0xff]  ;;  %188 = vmatpush.msra.mxu2 %v187_v3  ;;  %v240_v8 = vld [vmem:[#allocation3 + $0x1f0] sm:$0xff]  ;;  %110 = vmatpush.msra.mxu0 %v107_v5  ;;  %v185_v11 = vld [vmem:[#allocation3 + $0x168] sm:$0xff] }
   0x9   :  { %683 = vst [vmem:[%s956_s4 + $0x15] sm:$0x1f] %v779_v0  ;;  %242 = vmatpush.msra.mxu3 %v241_v4  ;;  %139 = vmatpush.msra.mxu1 %v86_v6  ;;  %v239_v12 = vld [vmem:[#allocation3 + $0x1e8] sm:$0xff]  ;;  %v105_v13 = vld [vmem:[#allocation3 + $0xe0] sm:$0xff]  ;;  %v104_v17 = vld [vmem:[#allocation3 + $0xd8] sm:$0xff] }
   0xa   :  { %684 = vst [vmem:[%s956_s4 + $0x35] sm:$0x1f] %v779_v0  ;;  %189 = vmatpush.msra.mxu2 %v186_v7  ;;  %v84_v14 = vld [vmem:[#allocation3 + $0x60] sm:$0xff]  ;;  %111 = vmatpush.msra.mxu0 %v106_v9  ;;  %v83_v18 = vld [vmem:[#allocation3 + $0x58] sm:$0xff]  ;;  %v103_v21 = vld [vmem:[#allocation3 + $0xd0] sm:$0xff] }
   0xb   :  { %39 = vst [vmem:[%s957_s5] sm:$0x3] %v779_v0  ;;  %243 = vmatpush.msra.mxu3 %v240_v8  ;;  %140 = vmatpush.msra.mxu1 %v85_v10  ;;  %v184_v15 = vld [vmem:[#allocation3 + $0x160] sm:$0xff]  ;;  %v183_v19 = vld [vmem:[#allocation3 + $0x158] sm:$0xff]  ;;  %v82_v22 = vld [vmem:[#allocation3 + $0x50] sm:$0xff] }
   0xc   :  { %61 = vst [vmem:[#allocation2 + $0x20] sm:$0x1f] %v779_v0  ;;  %v238_v16 = vld [vmem:[#allocation3 + $0x1e0] sm:$0xff]  ;;  %190 = vmatpush.msra.mxu2 %v185_v11  ;;  %112 = vmatpush.msra.mxu0 %v105_v13  ;;  %v237_v20 = vld [vmem:[#allocation3 + $0x1d8] sm:$0xff]  ;;  %v182_v23 = vld [vmem:[#allocation3 + $0x150] sm:$0xff] }
   0xd   :  { %62 = vst [vmem:[#allocation2 + $0x15] sm:$0x1f] %v779_v0  ;;  %244 = vmatpush.msra.mxu3 %v239_v12  ;;  %141 = vmatpush.msra.mxu1 %v84_v14  ;;  %v236_v24 = vld [vmem:[#allocation3 + $0x1d0] sm:$0xff]  ;;  %v102_v25 = vld [vmem:[#allocation3 + $0xc8] sm:$0xff]  ;;  %v101_v29 = vld [vmem:[#allocation3 + $0xc0] sm:$0xff] }
   0xe   :  { %63 = vst [vmem:[#allocation2 + $0x35] sm:$0x1f] %v779_v0  ;;  %191 = vmatpush.msra.mxu2 %v184_v15  ;;  %113 = vmatpush.msra.mxu0 %v104_v17  ;;  %v81_v26 = vld [vmem:[#allocation3 + $0x48] sm:$0xff]  ;;  %v80_v30 = vld [vmem:[#allocation3 + $0x40] sm:$0xff]  ;;  %v100_v33 = vld [vmem:[#allocation3 + $0xb8] sm:$0xff] }
   0xf   :  { %245 = vmatpush.msra.mxu3 %v238_v16  ;;  %142 = vmatpush.msra.mxu1 %v83_v18  ;;  %v181_v27 = vld [vmem:[#allocation3 + $0x148] sm:$0xff]  ;;  %v180_v31 = vld [vmem:[#allocation3 + $0x140] sm:$0xff]  ;;  %v79_v34 = vld [vmem:[#allocation3 + $0x38] sm:$0xff] }
  0x10   :  { %192 = vmatpush.msra.mxu2 %v183_v19  ;;  %114 = vmatpush.msra.mxu0 %v103_v21  ;;  %v235_v28 = vld [vmem:[#allocation3 + $0x1c8] sm:$0xff]  ;;  %v234_v32 = vld [vmem:[#allocation3 + $0x1c0] sm:$0xff]  ;;  %v179_v35 = vld [vmem:[#allocation3 + $0x138] sm:$0xff] }
  0x11   :  { %246 = vmatpush.msra.mxu3 %v237_v20  ;;  %143 = vmatpush.msra.mxu1 %v82_v22  ;;  %v233_v36 = vld [vmem:[#allocation3 + $0x1b8] sm:$0xff]  ;;  %v99_v37 = vld [vmem:[#allocation3 + $0xb0] sm:$0xff]  ;;  %v98_v41 = vld [vmem:[#allocation3 + $0xa8] sm:$0xff] }
  0x12   :  { %193 = vmatpush.msra.mxu2 %v182_v23  ;;  %115 = vmatpush.msra.mxu0 %v102_v25  ;;  %v78_v38 = vld [vmem:[#allocation3 + $0x30] sm:$0xff]  ;;  %v77_v42 = vld [vmem:[#allocation3 + $0x28] sm:$0xff]  ;;  %v97_v45 = vld [vmem:[#allocation3 + $0xa0] sm:$0xff] }
  0x13   :  { %247 = vmatpush.msra.mxu3 %v236_v24  ;;  %144 = vmatpush.msra.mxu1 %v81_v26  ;;  %v178_v39 = vld [vmem:[#allocation3 + $0x130] sm:$0xff]  ;;  %v177_v43 = vld [vmem:[#allocation3 + $0x128] sm:$0xff]  ;;  %v76_v46 = vld [vmem:[#allocation3 + $0x20] sm:$0xff] }
  0x14   :  { %194 = vmatpush.msra.mxu2 %v181_v27  ;;  %116 = vmatpush.msra.mxu0 %v101_v29  ;;  %v232_v40 = vld [vmem:[#allocation3 + $0x1b0] sm:$0xff]  ;;  %v231_v44 = vld [vmem:[#allocation3 + $0x1a8] sm:$0xff]  ;;  %v176_v47 = vld [vmem:[#allocation3 + $0x120] sm:$0xff] }
  0x15   :  { %248 = vmatpush.msra.mxu3 %v235_v28  ;;  %145 = vmatpush.msra.mxu1 %v80_v30  ;;  %v230_v48 = vld [vmem:[#allocation3 + $0x1a0] sm:$0xff]  ;;  %v96_v49 = vld [vmem:[#allocation3 + $0x98] sm:$0xff]  ;;  %v95_v56 = vld [vmem:[#allocation3 + $0x90] sm:$0xff] }
  0x16   :  { %195 = vmatpush.msra.mxu2 %v180_v31  ;;  %117 = vmatpush.msra.mxu0 %v100_v33  ;;  %v75_v50 = vld [vmem:[#allocation3 + $0x18] sm:$0xff]  ;;  %v40_v51 = vld [vmem:[%s952_s0 + $0x5] sm:$0xff]  ;;  %v834_v52 = vld [vmem:[%s953_s1] ss:$0 sm:$0xff] }
  0x17   :  { %249 = vmatpush.msra.mxu3 %v234_v32  ;;  %146 = vmatpush.msra.mxu1 %v79_v34  ;;  %v839_v53 = vld [vmem:[%s953_s1 + $0x1] ss:$0 sm:$0xff]  ;;  %v175_v54 = vld [vmem:[#allocation3 + $0x118] sm:$0xff]  ;;  %v74_v57 = vld [vmem:[#allocation3 + $0x10] sm:$0xff]  ;;  %v46_v58 = vmul.f32 %v834_v52, %v40_v51 }
  0x18   :  { %196 = vmatpush.msra.mxu2 %v179_v35  ;;  %118 = vmatpush.msra.mxu0 %v99_v37  ;;  %v229_v55 = vld [vmem:[#allocation3 + $0x198] sm:$0xff]  ;;  %v174_v59 = vld [vmem:[#allocation3 + $0x110] sm:$0xff]  ;;  %v94_v61 = vld [vmem:[#allocation3 + $0x88] sm:$0xff] }
  0x19   :  { %250 = vmatpush.msra.mxu3 %v233_v36  ;;  %147 = vmatpush.msra.mxu1 %v78_v38  ;;  %v228_v60 = vld [vmem:[#allocation3 + $0x190] sm:$0xff]  ;;  %v73_v62 = vld [vmem:[#allocation3 + $0x8] sm:$0xff]  ;;  %v843_v63 = vadd.f32 %v839_v53, %v46_v58  ;;  %v93_v2 = vld [vmem:[#allocation3 + $0x80] sm:$0xff] }
  0x1a   :  { %197 = vmatpush.msra.mxu2 %v178_v39  ;;  %119 = vmatpush.msra.mxu0 %v98_v41  ;;  %v173_v0 = vld [vmem:[#allocation3 + $0x108] sm:$0xff]  ;;  %v72_v3 = vld [vmem:[#allocation3] sm:$0xff]  ;;  %v403_v9 = vld [vmem:[#allocation3 + $0x378] sm:$0xff] }
  0x1b   :  { %251 = vmatpush.msra.mxu3 %v232_v40  ;;  %148 = vmatpush.msra.mxu1 %v77_v42  ;;  %v227_v1 = vld [vmem:[#allocation3 + $0x188] sm:$0xff]  ;;  %v56_v4 = vmax.f32 %v843_v63, 0.0  ;;  %v172_v6 = vld [vmem:[#allocation3 + $0x100] sm:$0xff]  ;;  %v295_v10 = vld [vmem:[#allocation3 + $0x278] sm:$0xff] }
  0x1c   :  { %198 = vmatpush.msra.mxu2 %v177_v43  ;;  %120 = vmatpush.msra.mxu0 %v97_v45  ;;  %v41_v5 = vld [vmem:[%s952_s0 + $0xd] sm:$0xff]  ;;  %v226_v7 = vld [vmem:[#allocation3 + $0x180] sm:$0xff]  ;;  %v349_v11 = vld [vmem:[#allocation3 + $0x2f8] sm:$0xff] }
  0x1d   :  { %252 = vmatpush.msra.mxu3 %v231_v44  ;;  %149 = vmatpush.msra.mxu1 %v76_v46  ;;  %v47_v8 = vmul.f32 %v834_v52, %v41_v5  ;;  %64 = vst [vmem:[#allocation2 + $0x5] sm:$0xff] %v56_v4  ;;  %v457_v12 = vld [vmem:[#allocation3 + $0x3f8] sm:$0xff]  ;;  %v402_v14 = vld [vmem:[#allocation3 + $0x370] sm:$0xff]  ;;  %v401_v19 = vld [vmem:[#allocation3 + $0x368] sm:$0xff] }
  0x1e   :  { %199 = vmatpush.msra.mxu2 %v176_v47  ;;  %121 = vmatpush.msra.mxu0 %v96_v49  ;;  %v294_v15 = vld [vmem:[#allocation3 + $0x270] sm:$0xff]  ;;  %v293_v20 = vld [vmem:[#allocation3 + $0x268] sm:$0xff]  ;;  %v400_v30 = vld [vmem:[#allocation3 + $0x360] sm:$0xff] }
  0x1f   :  { %253 = vmatpush.msra.mxu3 %v230_v48  ;;  %150 = vmatpush.msra.mxu1 %v75_v50  ;;  %v853_v13 = vadd.f32 %v839_v53, %v47_v8  ;;  %v348_v16 = vld [vmem:[#allocation3 + $0x2f0] sm:$0xff]  ;;  %v42_v21 = vld [vmem:[%s952_s0 + $0x25] sm:$0xff]  ;;  %v399_v35 = vld [vmem:[#allocation3 + $0x358] sm:$0xff] }
  0x20   :  { %200 = vmatpush.msra.mxu2 %v175_v54  ;;  %122 = vmatpush.msra.mxu0 %v95_v56  ;;  %v456_v17 = vld [vmem:[#allocation3 + $0x3f0] sm:$0xff]  ;;  %v48_v22 = vmul.f32 %v834_v52, %v42_v21  ;;  %v347_v23 = vld [vmem:[#allocation3 + $0x2e8] sm:$0xff]  ;;  %v292_v31 = vld [vmem:[#allocation3 + $0x260] sm:$0xff] }
  0x21   :  { %254 = vmatpush.msra.mxu3 %v229_v55  ;;  %151 = vmatpush.msra.mxu1 %v74_v57  ;;  %v57_v18 = vmax.f32 %v853_v13, 0.0  ;;  %v455_v24 = vld [vmem:[#allocation3 + $0x3e8] sm:$0xff]  ;;  %v346_v32 = vld [vmem:[#allocation3 + $0x2e0] sm:$0xff]  ;;  %v291_v36 = vld [vmem:[#allocation3 + $0x258] sm:$0xff] }
  0x22   :  { %201 = vmatpush.msra.mxu2 %v174_v59  ;;  %123 = vmatpush.msra.mxu0 %v94_v61  ;;  %v863_v28 = vadd.f32 %v839_v53, %v48_v22  ;;  %v454_v33 = vld [vmem:[#allocation3 + $0x3e0] sm:$0xff]  ;;  %v345_v37 = vld [vmem:[#allocation3 + $0x2d8] sm:$0xff]  ;;  %v43_v39 = vld [vmem:[%s952_s0 + $0x2d] sm:$0xff] }
  0x23   :  { %255 = vmatpush.msra.mxu3 %v228_v60  ;;  %152 = vmatpush.msra.mxu1 %v73_v62  ;;  %65 = vst [vmem:[#allocation2 + $0xd] sm:$0xff] %v57_v18  ;;  %v453_v38 = vld [vmem:[#allocation3 + $0x3d8] sm:$0xff]  ;;  %v398_v40 = vld [vmem:[#allocation3 + $0x350] sm:$0xff]  ;;  %v49_v42 = vmul.f32 %v834_v52, %v43_v39  ;;  %v397_v50 = vld [vmem:[#allocation3 + $0x348] sm:$0xff] }
  0x24   :  { %202 = vmatpush.msra.mxu2 %v173_v0  ;;  %124 = vmatpush.msra.mxu0 %v93_v2  ;;  %v88_v25 = vld [vmem:[#allocation2 + $0x1] sm:$0xff]  ;;  %v58_v34 = vmax.f32 %v863_v28, 0.0  ;;  %v290_v41 = vld [vmem:[#allocation3 + $0x250] sm:$0xff]  ;;  %v395_v59 = vld [vmem:[#allocation3 + $0x338] sm:$0xff] }
  0x25   :  { %256 = vmatpush.msra.mxu3 %v227_v1  ;;  %153 = vmatpush.msra.mxu1 %v72_v3  ;;  %v68_v26 = vld [vmem:[#allocation2] sm:$0xff]  ;;  %v879_v47 = vadd.f32 %v839_v53, %v49_v42  ;;  %v344_v48 = vld [vmem:[#allocation3 + $0x2d0] sm:$0xff]  ;;  %v289_v51 = vld [vmem:[#allocation3 + $0x248] sm:$0xff] }
  0x26   :  { %203 = vmatpush.msra.mxu2 %v172_v6  ;;  %296 = vmatpush.msrb.mxu0 %v295_v10  ;;  %v167_v27 = vld [vmem:[#allocation2 + $0x2] sm:$0xff]  ;;  %66 = vst [vmem:[#allocation2 + $0x25] sm:$0xff] %v58_v34  ;;  %v452_v49 = vld [vmem:[#allocation3 + $0x3d0] sm:$0xff]  ;;  %v287_v60 = vld [vmem:[#allocation3 + $0x238] sm:$0xff] }
  0x27   :  { %257 = vmatpush.msra.mxu3 %v226_v7  ;;  %350 = vmatpush.msrb.mxu1 %v349_v11  ;;  %v221_v29 = vld [vmem:[#allocation2 + $0x3] sm:$0xff]  ;;  %v59_v52 = vmax.f32 %v879_v47, 0.0  ;;  %v341_v2 = vld [vmem:[#allocation3 + $0x2b8] sm:$0xff]  ;;  %v394_v5 = vld [vmem:[#allocation3 + $0x330] sm:$0xff] }
  0x28   :  { %404 = vmatpush.msrb.mxu2 %v403_v9  ;;  %297 = vmatpush.msrb.mxu0 %v294_v15  ;;  %v343_v54 = vld [vmem:[#allocation3 + $0x2c8] sm:$0xff]  ;;  %v396_v53 = vld [vmem:[#allocation3 + $0x340] sm:$0xff]  ;;  %v449_v3 = vld [vmem:[#allocation3 + $0x3b8] sm:$0xff] }
  0x29   :  { %458 = vmatpush.msrb.mxu3 %v457_v12  ;;  %351 = vmatpush.msrb.mxu1 %v348_v16  ;;  %v451_v55 = vld [vmem:[#allocation3 + $0x3c8] sm:$0xff]  ;;  %v288_v56 = vld [vmem:[#allocation3 + $0x240] sm:$0xff]  ;;  %67 = vst [vmem:[#allocation2 + $0x2d] sm:$0xff] %v59_v52  ;;  %v286_v6 = vld [vmem:[#allocation3 + $0x230] sm:$0xff] }
  0x2a   :  { %405 = vmatpush.msrb.mxu2 %v402_v14  ;;  %298 = vmatpush.msrb.mxu0 %v293_v20  ;;  %v872_v43 = vld [vmem:[#allocation2 + $0x9] sm:$0xff]  ;;  %v342_v57 = vld [vmem:[#allocation3 + $0x2c0] sm:$0xff] }
  0x2b   :  { %459 = vmatpush.msrb.mxu3 %v456_v17  ;;  %125 = vmatmul.f32.vlgmr.msra.gmra.mxu0 %v88_v25  ;;  %v874_v44 = vld [vmem:[#allocation2 + $0x8] sm:$0xff]  ;;  %v450_v58 = vld [vmem:[#allocation3 + $0x3c0] sm:$0xff]  ;;  %v340_v7 = vld [vmem:[#allocation3 + $0x2b0] sm:$0xff] }
  0x2c   :  { %406 = vmatpush.msrb.mxu2 %v401_v19  ;;  %154 = vmatmul.f32.vlgmr.msra.gmra.mxu1 %v68_v26  ;;  %v876_v45 = vld [vmem:[#allocation2 + $0xa] sm:$0xff]  ;;  %v392_v14 = vld [vmem:[#allocation3 + $0x320] sm:$0xff]  ;;  %v337_v25 = vld [vmem:[#allocation3 + $0x298] sm:$0xff] }
  0x2d   :  { %204 = vmatmul.f32.vlgmr.msra.gmra.mxu2 %v167_v27  ;;  %258 = vmatmul.f32.vlgmr.msra.gmra.mxu3 %v221_v29  ;;  %v222_v46 = vld [vmem:[#allocation2 + $0xb] sm:$0xff]  ;;  %v90_v61 = vld [vmem:[#allocation2 + $0x21] sm:$0xff]  ;;  %v445_v26 = vld [vmem:[#allocation3 + $0x398] sm:$0xff] }
  0x2e   :  { %352 = vmatpush.msrb.mxu1 %v347_v23  ;;  %460 = vmatpush.msrb.mxu3 %v455_v24  ;;  %v70_v62 = vld [vmem:[#allocation2 + $0x20] sm:$0xff]  ;;  %v448_v8 = vld [vmem:[#allocation3 + $0x3b0] sm:$0xff]  ;;  %v393_v9 = vld [vmem:[#allocation3 + $0x328] sm:$0xff] }
  0x2f   :  { %407 = vmatpush.msrb.mxu2 %v400_v30  ;;  %299 = vmatpush.msrb.mxu0 %v292_v31  ;;  %v169_v0 = vld [vmem:[#allocation2 + $0x22] sm:$0xff]  ;;  %v391_v23 = vld [vmem:[#allocation3 + $0x318] sm:$0xff]  ;;  %v390_v27 = vld [vmem:[#allocation3 + $0x310] sm:$0xff] }
  0x30   :  { %353 = vmatpush.msrb.mxu1 %v346_v32  ;;  %461 = vmatpush.msrb.mxu3 %v454_v33  ;;  %v223_v1 = vld [vmem:[#allocation2 + $0x23] sm:$0xff]  ;;  %v224_v22 = vld [vmem:[#allocation2 + $0x2b] sm:$0xff]  ;;  %v283_v24 = vld [vmem:[#allocation3 + $0x218] sm:$0xff] }
  0x31   :  { %408 = vmatpush.msrb.mxu2 %v399_v35  ;;  %300 = vmatpush.msrb.mxu0 %v291_v36  ;;  %v285_v10 = vld [vmem:[#allocation3 + $0x228] sm:$0xff]  ;;  %v284_v15 = vld [vmem:[#allocation3 + $0x220] sm:$0xff]  ;;  %v282_v29 = vld [vmem:[#allocation3 + $0x210] sm:$0xff] }
  0x32   :  { %354 = vmatpush.msrb.mxu1 %v345_v37  ;;  %462 = vmatpush.msrb.mxu3 %v453_v38  ;;  %v339_v11 = vld [vmem:[#allocation3 + $0x2a8] sm:$0xff]  ;;  %v338_v16 = vld [vmem:[#allocation3 + $0x2a0] sm:$0xff]  ;;  %v336_v30 = vld [vmem:[#allocation3 + $0x290] sm:$0xff] }
  0x33   :  { %409 = vmatpush.msrb.mxu2 %v398_v40  ;;  %301 = vmatpush.msrb.mxu0 %v290_v41  ;;  %v447_v12 = vld [vmem:[#allocation3 + $0x3a8] sm:$0xff]  ;;  %v446_v17 = vld [vmem:[#allocation3 + $0x3a0] sm:$0xff]  ;;  %v444_v31 = vld [vmem:[#allocation3 + $0x390] sm:$0xff] }
  0x34   :  { %128 = vmatmul.f32.gmra.mxu0 %v872_v43  ;;  %157 = vmatmul.f32.gmra.mxu1 %v874_v44  ;;  %v887_v19 = vld [vmem:[#allocation2 + $0x29] sm:$0xff]  ;;  %v388_v37 = vld [vmem:[#allocation3 + $0x300] sm:$0xff] }
  0x35   :  { %207 = vmatmul.f32.gmra.mxu2 %v876_v45  ;;  %261 = vmatmul.f32.gmra.mxu3 %v222_v46  ;;  %v889_v20 = vld [vmem:[#allocation2 + $0x28] sm:$0xff]  ;;  %v280_v38 = vld [vmem:[#allocation3 + $0x200] sm:$0xff] }
  0x36   :  { %355 = vmatpush.msrb.mxu1 %v344_v48  ;;  %463 = vmatpush.msrb.mxu3 %v452_v49  ;;  %v891_v21 = vld [vmem:[#allocation2 + $0x2a] sm:$0xff]  ;;  %v334_v39 = vld [vmem:[#allocation3 + $0x280] sm:$0xff]  ;;  %v619_v48 = vld [vmem:[#allocation3 + $0x578] sm:$0xff] }
  0x37   :  { %410 = vmatpush.msrb.mxu2 %v397_v50  ;;  %302 = vmatpush.msrb.mxu0 %v289_v51  ;;  %v389_v32 = vld [vmem:[#allocation3 + $0x308] sm:$0xff]  ;;  %v442_v40 = vld [vmem:[#allocation3 + $0x380] sm:$0xff]  ;;  %v511_v49 = vld [vmem:[#allocation3 + $0x478] sm:$0xff] }
  0x38   :  { %356 = vmatpush.msrb.mxu1 %v343_v54  ;;  %464 = vmatpush.msrb.mxu3 %v451_v55  ;;  %v281_v33 = vld [vmem:[#allocation3 + $0x208] sm:$0xff]  ;;  %v565_v50 = vld [vmem:[#allocation3 + $0x4f8] sm:$0xff]  ;;  %v618_v51 = vld [vmem:[#allocation3 + $0x570] sm:$0xff] }
  0x39   :  { %411 = vmatpush.msrb.mxu2 %v396_v53  ;;  %303 = vmatpush.msrb.mxu0 %v288_v56  ;;  %v335_v35 = vld [vmem:[#allocation3 + $0x288] sm:$0xff]  ;;  %v510_v54 = vld [vmem:[#allocation3 + $0x470] sm:$0xff]  ;;  %v508_v63 = vld [vmem:[#allocation3 + $0x460] sm:$0xff] }
  0x3a   :  { %357 = vmatpush.msrb.mxu1 %v342_v57  ;;  %465 = vmatpush.msrb.mxu3 %v450_v58  ;;  %v443_v36 = vld [vmem:[#allocation3 + $0x388] sm:$0xff]  ;;  %v564_v55 = vld [vmem:[#allocation3 + $0x4f0] sm:$0xff]  ;;  %v616_v58 = vld [vmem:[#allocation3 + $0x560] sm:$0xff] }
  0x3b   :  { %412 = vmatpush.msrb.mxu2 %v395_v59  ;;  %304 = vmatpush.msrb.mxu0 %v287_v60  ;;  %v275_v41 = vld [vmem:[#allocation2 + $0x4] sm:$0xff]  ;;  %v276_v59 = vld [vmem:[#allocation2 + $0xc] sm:$0xff] }
  0x3c   :  { %131 = vmatmul.f32.gmra.mxu0 %v90_v61  ;;  %160 = vmatmul.f32.gmra.mxu1 %v70_v62  ;;  %v383_v42 = vld [vmem:[#allocation2 + $0x6] sm:$0xff]  ;;  %v384_v60 = vld [vmem:[#allocation2 + $0xe] sm:$0xff]  ;;  %v615_v62 = vld [vmem:[#allocation3 + $0x558] sm:$0xff] }
  0x3d   :  { %210 = vmatmul.f32.gmra.mxu2 %v169_v0  ;;  %264 = vmatmul.f32.gmra.mxu3 %v223_v1  ;;  %v437_v46 = vld [vmem:[#allocation2 + $0x7] sm:$0xff]  ;;  %v438_v61 = vld [vmem:[#allocation2 + $0xf] sm:$0xff]  ;;  %v507_v0 = vld [vmem:[#allocation3 + $0x458] sm:$0xff] }
  0x3e   :  { %358 = vmatpush.msrb.mxu1 %v341_v2  ;;  %466 = vmatpush.msrb.mxu3 %v449_v3  ;;  %v617_v53 = vld [vmem:[#allocation3 + $0x568] sm:$0xff]  ;;  %v561_v1 = vld [vmem:[#allocation3 + $0x4d8] sm:$0xff]  ;;  %v614_v2 = vld [vmem:[#allocation3 + $0x550] sm:$0xff] }
  0x3f   :  { %413 = vmatpush.msrb.mxu2 %v394_v5  ;;  %305 = vmatpush.msrb.mxu0 %v286_v6  ;;  %v509_v56 = vld [vmem:[#allocation3 + $0x468] sm:$0xff]  ;;  %v506_v3 = vld [vmem:[#allocation3 + $0x450] sm:$0xff]  ;;  %v504_v13 = vld [vmem:[#allocation3 + $0x440] sm:$0xff] }
  0x40   :  { %359 = vmatpush.msrb.mxu1 %v340_v7  ;;  %467 = vmatpush.msrb.mxu3 %v448_v8  ;;  %v563_v57 = vld [vmem:[#allocation3 + $0x4e8] sm:$0xff]  ;;  %v560_v5 = vld [vmem:[#allocation3 + $0x4d0] sm:$0xff]  ;;  %v500_v28 = vld [vmem:[#allocation3 + $0x420] sm:$0xff] }
  0x41   :  { %414 = vmatpush.msrb.mxu2 %v393_v9  ;;  %306 = vmatpush.msrb.mxu0 %v285_v10  ;;  %v613_v6 = vld [vmem:[#allocation3 + $0x548] sm:$0xff]  ;;  %v612_v9 = vld [vmem:[#allocation3 + $0x540] sm:$0xff] }
  0x42   :  { %360 = vmatpush.msrb.mxu1 %v339_v11  ;;  %468 = vmatpush.msrb.mxu3 %v447_v12  ;;  %v505_v7 = vld [vmem:[#allocation3 + $0x448] sm:$0xff]  ;;  %v496_v47 = vld [vmem:[#allocation3 + $0x400] sm:$0xff] }
  0x43   :  { %415 = vmatpush.msrb.mxu2 %v392_v14  ;;  %307 = vmatpush.msrb.mxu0 %v284_v15  ;;  %v559_v8 = vld [vmem:[#allocation3 + $0x4c8] sm:$0xff]  ;;  %v611_v14 = vld [vmem:[#allocation3 + $0x538] sm:$0xff] }
  0x44   :  { %361 = vmatpush.msrb.mxu1 %v338_v16  ;;  %469 = vmatpush.msrb.mxu3 %v446_v17  ;;  %v277_v10 = vld [vmem:[#allocation2 + $0x24] sm:$0xff]  ;;  %v503_v15 = vld [vmem:[#allocation3 + $0x438] sm:$0xff]  ;;  %v610_v17 = vld [vmem:[#allocation3 + $0x530] sm:$0xff] }
  0x45   :  { %134 = vmatmul.f32.gmra.mxu0 %v887_v19  ;;  %163 = vmatmul.f32.gmra.mxu1 %v889_v20  ;;  %v385_v11 = vld [vmem:[#allocation2 + $0x26] sm:$0xff]  ;;  %v557_v16 = vld [vmem:[#allocation3 + $0x4b8] sm:$0xff] }
  0x46   :  { %213 = vmatmul.f32.gmra.mxu2 %v891_v21  ;;  %267 = vmatmul.f32.gmra.mxu3 %v224_v22  ;;  %v439_v12 = vld [vmem:[#allocation2 + $0x27] sm:$0xff]  ;;  %v502_v22 = vld [vmem:[#allocation3 + $0x430] sm:$0xff] }
  0x47   :  { %416 = vmatpush.msrb.mxu2 %v391_v23  ;;  %308 = vmatpush.msrb.mxu0 %v283_v24  ;;  %v556_v23 = vld [vmem:[#allocation3 + $0x4b0] sm:$0xff]  ;;  %v609_v24 = vld [vmem:[#allocation3 + $0x528] sm:$0xff] }
  0x48   :  { %362 = vmatpush.msrb.mxu1 %v337_v25  ;;  %470 = vmatpush.msrb.mxu3 %v445_v26  ;;  %v501_v25 = vld [vmem:[#allocation3 + $0x428] sm:$0xff] }
  0x49   :  { %417 = vmatpush.msrb.mxu2 %v390_v27  ;;  %309 = vmatpush.msrb.mxu0 %v282_v29  ;;  %v555_v26 = vld [vmem:[#allocation3 + $0x4a8] sm:$0xff]  ;;  %v608_v27 = vld [vmem:[#allocation3 + $0x520] sm:$0xff] }
  0x4a   :  { %363 = vmatpush.msrb.mxu1 %v336_v30  ;;  %471 = vmatpush.msrb.mxu3 %v444_v31  ;;  %v278_v29 = vld [vmem:[#allocation2 + $0x2c] sm:$0xff] }
  0x4b   :  { %418 = vmatpush.msrb.mxu2 %v389_v32  ;;  %310 = vmatpush.msrb.mxu0 %v281_v33  ;;  %v386_v30 = vld [vmem:[#allocation2 + $0x2e] sm:$0xff]  ;;  %v607_v32 = vld [vmem:[#allocation3 + $0x518] sm:$0xff] }
  0x4c   :  { %364 = vmatpush.msrb.mxu1 %v335_v35  ;;  %472 = vmatpush.msrb.mxu3 %v443_v36  ;;  %v440_v31 = vld [vmem:[#allocation2 + $0x2f] sm:$0xff]  ;;  %v499_v33 = vld [vmem:[#allocation3 + $0x418] sm:$0xff] }
  0x4d   :  { %419 = vmatpush.msrb.mxu2 %v388_v37  ;;  %311 = vmatpush.msrb.mxu0 %v280_v38  ;;  %v553_v35 = vld [vmem:[#allocation3 + $0x498] sm:$0xff]  ;;  %v606_v36 = vld [vmem:[#allocation3 + $0x510] sm:$0xff] }
  0x4e   :  { %365 = vmatpush.msrb.mxu1 %v334_v39  ;;  %473 = vmatpush.msrb.mxu3 %v442_v40  ;;  %v498_v37 = vld [vmem:[#allocation3 + $0x410] sm:$0xff]  ;;  %v605_v39 = vld [vmem:[#allocation3 + $0x508] sm:$0xff] }
  0x4f   :  { %312 = vmatmul.f32.vlgmr.msrb.gmra.mxu0 %v275_v41  ;;  %366 = vmatmul.f32.vlgmr.msrb.gmra.mxu1 %v56_v4  ;;  %v562_v4 = vld [vmem:[#allocation3 + $0x4e0] sm:$0xff]  ;;  %v552_v38 = vld [vmem:[#allocation3 + $0x490] sm:$0xff]  ;;  %v497_v40 = vld [vmem:[#allocation3 + $0x408] sm:$0xff] }
  0x50   :  { %420 = vmatmul.f32.vlgmr.msrb.gmra.mxu2 %v383_v42  ;;  %474 = vmatmul.f32.vlgmr.msrb.gmra.mxu3 %v437_v46  ;;  %v551_v41 = vld [vmem:[#allocation3 + $0x488] sm:$0xff]  ;;  %v604_v42 = vld [vmem:[#allocation3 + $0x500] sm:$0xff]  ;;  %v492_v46 = vld [vmem:[#allocation2 + $0x10] sm:$0xff] }
  0x51   :  { %620 = vmatpush.msra.mxu2 %v619_v48  ;;  %512 = vmatpush.msra.mxu0 %v511_v49  ;;  %v546_v48 = vld [vmem:[#allocation2 + $0x11] sm:$0xff] }
  0x52   :  { %726 = vmatpush.msra.mxu3 %v511_v49  ;;  %566 = vmatpush.msra.mxu1 %v565_v50  ;;  %v600_v49 = vld [vmem:[#allocation2 + $0x12] sm:$0xff] }
  0x53   :  { %621 = vmatpush.msra.mxu2 %v618_v51  ;;  %513 = vmatpush.msra.mxu0 %v510_v54  ;;  %v494_v50 = vld [vmem:[#allocation2 + $0x30] sm:$0xff] }
  0x54   :  { %727 = vmatpush.msra.mxu3 %v510_v54  ;;  %567 = vmatpush.msra.mxu1 %v564_v55  ;;  %v548_v51 = vld [vmem:[#allocation2 + $0x31] sm:$0xff] }
  0x55   :  { %622 = vmatpush.msra.mxu2 %v617_v53  ;;  %514 = vmatpush.msra.mxu0 %v509_v56  ;;  %v602_v54 = vld [vmem:[#allocation2 + $0x32] sm:$0xff] }
  0x56   :  { %728 = vmatpush.msra.mxu3 %v509_v56  ;;  %568 = vmatpush.msra.mxu1 %v563_v57 }
  0x57   :  { %623 = vmatpush.msra.mxu2 %v616_v58  ;;  %515 = vmatpush.msra.mxu0 %v508_v63 }
  0x58   :  { %729 = vmatpush.msra.mxu3 %v508_v63  ;;  %569 = vmatpush.msra.mxu1 %v562_v4 }
  0x59   :  { %315 = vmatmul.f32.gmra.mxu0 %v276_v59  ;;  %369 = vmatmul.f32.gmra.mxu1 %v57_v18  ;;  %v558_v18 = vld [vmem:[#allocation3 + $0x4c0] sm:$0xff] }
  0x5a   :  { %423 = vmatmul.f32.gmra.mxu2 %v384_v60  ;;  %477 = vmatmul.f32.gmra.mxu3 %v438_v61 }
  0x5b   :  { %624 = vmatpush.msra.mxu2 %v615_v62  ;;  %516 = vmatpush.msra.mxu0 %v507_v0 }
  0x5c   :  { %730 = vmatpush.msra.mxu3 %v507_v0  ;;  %570 = vmatpush.msra.mxu1 %v561_v1 }
  0x5d   :  { %625 = vmatpush.msra.mxu2 %v614_v2  ;;  %517 = vmatpush.msra.mxu0 %v506_v3 }
  0x5e   :  { %731 = vmatpush.msra.mxu3 %v506_v3  ;;  %571 = vmatpush.msra.mxu1 %v560_v5 }
  0x5f   :  { %626 = vmatpush.msra.mxu2 %v613_v6  ;;  %518 = vmatpush.msra.mxu0 %v505_v7 }
  0x60   :  { %732 = vmatpush.msra.mxu3 %v505_v7  ;;  %572 = vmatpush.msra.mxu1 %v559_v8 }
  0x61   :  { %627 = vmatpush.msra.mxu2 %v612_v9  ;;  %519 = vmatpush.msra.mxu0 %v504_v13 }
  0x62   :  { %733 = vmatpush.msra.mxu3 %v504_v13  ;;  %573 = vmatpush.msra.mxu1 %v558_v18 }
  0x63   :  { %318 = vmatmul.f32.gmra.mxu0 %v277_v10  ;;  %372 = vmatmul.f32.gmra.mxu1 %v58_v34  ;;  %v554_v34 = vld [vmem:[#allocation3 + $0x4a0] sm:$0xff] }
  0x64   :  { %426 = vmatmul.f32.gmra.mxu2 %v385_v11  ;;  %480 = vmatmul.f32.gmra.mxu3 %v439_v12 }
  0x65   :  { %628 = vmatpush.msra.mxu2 %v611_v14  ;;  %520 = vmatpush.msra.mxu0 %v503_v15 }
  0x66   :  { %734 = vmatpush.msra.mxu3 %v503_v15  ;;  %574 = vmatpush.msra.mxu1 %v557_v16 }
  0x67   :  { %629 = vmatpush.msra.mxu2 %v610_v17  ;;  %521 = vmatpush.msra.mxu0 %v502_v22 }
  0x68   :  { %735 = vmatpush.msra.mxu3 %v502_v22  ;;  %575 = vmatpush.msra.mxu1 %v556_v23 }
  0x69   :  { %630 = vmatpush.msra.mxu2 %v609_v24  ;;  %522 = vmatpush.msra.mxu0 %v501_v25 }
  0x6a   :  { %736 = vmatpush.msra.mxu3 %v501_v25  ;;  %576 = vmatpush.msra.mxu1 %v555_v26 }
  0x6b   :  { %631 = vmatpush.msra.mxu2 %v608_v27  ;;  %523 = vmatpush.msra.mxu0 %v500_v28 }
  0x6c   :  { %737 = vmatpush.msra.mxu3 %v500_v28  ;;  %577 = vmatpush.msra.mxu1 %v554_v34 }
  0x6d   :  { %321 = vmatmul.f32.gmra.mxu0 %v278_v29  ;;  %375 = vmatmul.f32.gmra.mxu1 %v59_v52  ;;  %v550_v52 = vld [vmem:[#allocation3 + $0x480] sm:$0xff] }
  0x6e   :  { %429 = vmatmul.f32.gmra.mxu2 %v386_v30  ;;  %483 = vmatmul.f32.gmra.mxu3 %v440_v31 }
  0x6f   :  { %632 = vmatpush.msra.mxu2 %v607_v32  ;;  %524 = vmatpush.msra.mxu0 %v499_v33 }
  0x70   :  { %738 = vmatpush.msra.mxu3 %v499_v33  ;;  %578 = vmatpush.msra.mxu1 %v553_v35 }
  0x71   :  { %633 = vmatpush.msra.mxu2 %v606_v36  ;;  %525 = vmatpush.msra.mxu0 %v498_v37 }
  0x72   :  { %739 = vmatpush.msra.mxu3 %v498_v37  ;;  %579 = vmatpush.msra.mxu1 %v552_v38 }
  0x73   :  { %634 = vmatpush.msra.mxu2 %v605_v39  ;;  %526 = vmatpush.msra.mxu0 %v497_v40 }
  0x74   :  { %740 = vmatpush.msra.mxu3 %v497_v40  ;;  %580 = vmatpush.msra.mxu1 %v551_v41 }
  0x75   :  { %635 = vmatpush.msra.mxu2 %v604_v42  ;;  %527 = vmatpush.msra.mxu0 %v496_v47 }
  0x76   :  { %741 = vmatpush.msra.mxu3 %v496_v47  ;;  %581 = vmatpush.msra.mxu1 %v550_v52 }
  0x77   :  { %528 = vmatmul.f32.vlgmr.msra.gmra.mxu0 %v874_v44  ;;  %531 = vmatmul.f32.vlgmr.msra.gmra.mxu3 %v492_v46 }
  0x78   :  { %582 = vmatmul.f32.vlgmr.msra.gmra.mxu1 %v872_v43  ;;  %636 = vmatmul.f32.vlgmr.msra.gmra.mxu2 %v876_v45 }
  0x7f   :  { %534 = vmatmul.f32.gmra.mxu3 %v889_v20 }
  0x80   :  { %585 = vmatmul.f32.gmra.mxu1 %v546_v48  ;;  %639 = vmatmul.f32.gmra.mxu2 %v600_v49 }
  0x87   :  { %537 = vmatmul.f32.gmra.mxu3 %v494_v50 }
  0x88   :  { %588 = vmatmul.f32.gmra.mxu1 %v887_v19  ;;  %642 = vmatmul.f32.gmra.mxu2 %v891_v21 }
  0x90   :  { %591 = vmatmul.f32.gmra.mxu1 %v548_v51  ;;  %645 = vmatmul.f32.gmra.mxu2 %v602_v54 }
  0xa8   :  { %v126_v44 = vpop.f32.mrf.mxu0 }
  0xa9   :  { %v155_v43 = vpop.f32.mrf.mxu1 }
  0xaa   :  { %v156_v8 = vadd.f32 %v155_v43, %v126_v44 }
  0xb0   :  { %v205_v55 = vpop.f32.mrf.mxu2  ;;  %v259_v45 = vpop.f32.mrf.mxu3 }
  0xb1   :  { %v129_v53 = vpop.f32.mrf.mxu0  ;;  %v158_v56 = vpop.f32.mrf.mxu1  ;;  %v217_v18 = vadd.f32 %v205_v55, %v156_v8 }
  0xb2   :  { %v159_v14 = vadd.f32 %v158_v56, %v129_v53 }
  0xb3   :  { %v271_v12 = vadd.f32 %v259_v45, %v217_v18 }
  0xb8   :  { %v208_v57 = vpop.f32.mrf.mxu2  ;;  %v262_v20 = vpop.f32.mrf.mxu3 }
  0xb9   :  { %v132_v58 = vpop.f32.mrf.mxu0  ;;  %v161_v63 = vpop.f32.mrf.mxu1  ;;  %v218_v22 = vadd.f32 %v208_v57, %v159_v14 }
  0xba   :  { %v162_v25 = vadd.f32 %v161_v63, %v132_v58 }
  0xbb   :  { %v272_v24 = vadd.f32 %v262_v20, %v218_v22 }
  0xc0   :  { %v211_v4 = vpop.f32.mrf.mxu2  ;;  %v265_v59 = vpop.f32.mrf.mxu3 }
  0xc1   :  { %v219_v29 = vadd.f32 %v211_v4, %v162_v25 }
  0xc2   :  { %v135_v60 = vpop.f32.mrf.mxu0  ;;  %v164_v19 = vpop.f32.mrf.mxu1 }
  0xc3   :  { %v273_v36 = vadd.f32 %v265_v59, %v219_v29  ;;  %v165_v37 = vadd.f32 %v164_v19, %v135_v60 }
  0xc9   :  { %v214_v61 = vpop.f32.mrf.mxu2  ;;  %v268_v21 = vpop.f32.mrf.mxu3 }
  0xca   :  { %v220_v47 = vadd.f32 %v214_v61, %v165_v37 }
  0xcc   :  { %v313_v62 = vpop.f32.mrf.mxu0  ;;  %v367_v0 = vpop.f32.mrf.mxu1  ;;  %v274_v51 = vadd.f32 %v268_v21, %v220_v47 }
  0xcd   :  { %v325_v15 = vadd.f32 %v313_v62, %v271_v12 }
  0xcf   :  { %v379_v23 = vadd.f32 %v367_v0, %v325_v15 }
  0xd3   :  { %v421_v1 = vpop.f32.mrf.mxu2  ;;  %v475_v2 = vpop.f32.mrf.mxu3 }
  0xd4   :  { %v433_v26 = vadd.f32 %v421_v1, %v379_v23 }
  0xd6   :  { %v316_v3 = vpop.f32.mrf.mxu0  ;;  %v370_v5 = vpop.f32.mrf.mxu1  ;;  %v487_v30 = vadd.f32 %v475_v2, %v433_v26  ;;  %v653_v26 = vld [vmem:[%s957_s5] sm:$0x1] }
  0xd7   :  { %v326_v34 = vadd.f32 %v316_v3, %v272_v24 }
  0xd9   :  { %v380_v33 = vadd.f32 %v370_v5, %v326_v34  ;;  %v665_v34 = vld [vmem:[%s957_s5 + $0x1] sm:$0x1] }
  0xdd   :  { %v424_v6 = vpop.f32.mrf.mxu2  ;;  %v478_v7 = vpop.f32.mrf.mxu3 }
  0xde   :  { %v434_v38 = vadd.f32 %v424_v6, %v380_v33 }
  0xe0   :  { %v319_v9 = vpop.f32.mrf.mxu0  ;;  %v373_v13 = vpop.f32.mrf.mxu1  ;;  %v488_v52 = vadd.f32 %v478_v7, %v434_v38 }
  0xe1   :  { %v327_v39 = vadd.f32 %v319_v9, %v273_v36 }
  0xe3   :  { %v381_v49 = vadd.f32 %v373_v13, %v327_v39 }
  0xe7   :  { %v427_v10 = vpop.f32.mrf.mxu2  ;;  %v481_v11 = vpop.f32.mrf.mxu3 }
  0xe8   :  { %v435_v54 = vadd.f32 %v427_v10, %v381_v49 }
  0xea   :  { %v322_v16 = vpop.f32.mrf.mxu0  ;;  %v376_v17 = vpop.f32.mrf.mxu1  ;;  %v489_v53 = vadd.f32 %v481_v11, %v435_v54  ;;  %v712_v54 = vld [vmem:[%s955_s3 + $0x1] sm:$0x1] }
  0xeb   :  { %v328_v44 = vadd.f32 %v322_v16, %v274_v51 }
  0xed   :  { %v382_v20 = vadd.f32 %v376_v17, %v328_v44 }
  0xf1   :  { %v430_v27 = vpop.f32.mrf.mxu2  ;;  %v484_v28 = vpop.f32.mrf.mxu3 }
  0xf2   :  { %v436_v63 = vadd.f32 %v430_v27, %v382_v20 }
  0xf4   :  { %v529_v31 = vpop.f32.mrf.mxu0  ;;  %v490_v19 = vadd.f32 %v484_v28, %v436_v63 }
  0xf5   :  { %v583_v32 = vpop.f32.mrf.mxu1  ;;  %v541_v35 = vadd.f32 %v529_v31, %v487_v30 }
  0xf7   :  { %v595_v40 = vadd.f32 %v583_v32, %v541_v35 }
  0xfa   :  { %v532_v41 = vpop.f32.mrf.mxu3 }
  0xfb   :  { %v637_v42 = vpop.f32.mrf.mxu2  ;;  %v542_v50 = vadd.f32 %v532_v41, %v488_v52 }
  0xfc   :  { %v649_v46 = vadd.f32 %v637_v42, %v595_v40 }
  0xfd   :  { %v586_v48 = vpop.f32.mrf.mxu1 }
  0xfe   :  { %685 = vst [vmem:[%s956_s4 + $0x5] sm:$0xff] %v649_v46  ;;  %v596_v43 = vadd.f32 %v586_v48, %v542_v50  ;;  %v666_v1 = vmul.f32 %v649_v46, %v649_v46  ;;  %v699_v48 = vld [vmem:[%s955_s3] sm:$0x1] }
 0x102   :  { %v535_v55 = vpop.f32.mrf.mxu3 }
 0x103   :  { %v640_v45 = vpop.f32.mrf.mxu2  ;;  %v543_v58 = vadd.f32 %v535_v55, %v489_v53 }
 0x104   :  { %v650_v56 = vadd.f32 %v640_v45, %v596_v43 }
 0x105   :  { %v589_v57 = vpop.f32.mrf.mxu1 }
 0x106   :  { %686 = vst [vmem:[%s956_s4 + $0xd] sm:$0xff] %v650_v56  ;;  %v597_v4 = vadd.f32 %v589_v57, %v543_v58  ;;  %v667_v0 = vmul.f32 %v650_v56, %v650_v56  ;;  %v654_v2 = vadd.f32 %v650_v56, %v649_v46 }
 0x108   :  { %v670_v7 = vadd.f32 %v667_v0, %v666_v1 }
 0x10a   :  { %v538_v59 = vpop.f32.mrf.mxu3 }
 0x10b   :  { %v643_v60 = vpop.f32.mrf.mxu2  ;;  %v544_v21 = vadd.f32 %v538_v59, %v490_v19 }
 0x10c   :  { %v651_v61 = vadd.f32 %v643_v60, %v597_v4 }
 0x10d   :  { %v592_v62 = vpop.f32.mrf.mxu1 }
 0x10e   :  { %687 = vst [vmem:[%s956_s4 + $0x25] sm:$0xff] %v651_v61  ;;  %v668_v3 = vmul.f32 %v651_v61, %v651_v61  ;;  %v598_v5 = vadd.f32 %v592_v62, %v544_v21  ;;  %v655_v8 = vadd.f32 %v654_v2, %v651_v61 }
 0x110   :  { %v671_v13 = vadd.f32 %v670_v7, %v668_v3 }
 0x113   :  { %v646_v6 = vpop.f32.mrf.mxu2 }
 0x114   :  { %v652_v9 = vadd.f32 %v646_v6, %v598_v5 }
 0x116   :  { %v656_v18 = vadd.f32 %v655_v8, %v652_v9  ;;  %v669_v10 = vmul.f32 %v652_v9, %v652_v9  ;;  %688 = vst [vmem:[%s956_s4 + $0x2d] sm:$0xff] %v652_v9 }
 0x118   :  { %v657_v11 = vrot.slane %v656_v18, 4  ;;  %v672_v12 = vadd.f32 %v671_v13, %v669_v10 }
 0x11a   :  { %v658_v14 = vadd.f32 %v657_v11, %v656_v18  ;;  %v673_v15 = vrot.slane %v672_v12, 4 }
 0x11c   :  { %v659_v16 = vrot.slane %v658_v14, 2  ;;  %v674_v17 = vadd.f32 %v673_v15, %v672_v12 }
 0x11e   :  { %v660_v22 = vadd.f32 %v659_v16, %v658_v14  ;;  %v675_v23 = vrot.slane %v674_v17, 2 }
 0x120   :  { %v661_v24 = vrot.slane %v660_v22, 1  ;;  %v676_v25 = vadd.f32 %v675_v23, %v674_v17 }
 0x122   :  { %v662_v27 = vadd.f32 %v661_v24, %v660_v22  ;;  %v677_v28 = vrot.slane %v676_v25, 1 }
 0x124   :  { %v663_v29 = vadd.f32 %v662_v27, %v653_v26  ;;  %v678_v30 = vadd.f32 %v677_v28, %v676_v25 }
 0x126   :  { %664 = vst [vmem:[%s957_s5] sm:$0x1] %v663_v29  ;;  %v679_v31 = vadd.f32 %v678_v30, %v665_v34 }
 0x128   :  { %680 = vst [vmem:[%s957_s5 + $0x1] sm:$0x1] %v679_v31 }
 0x12d   :  { %v692_v32 = vld [vmem:[%s957_s5] sm:$0x1] }
 0x12e   :  { %v693_v33 = vmul.f32 0.03125, %v692_v32 }
 0x12f   :  { %v694_v35 = vld [vmem:[%s957_s5 + $0x1] sm:$0x1] }
 0x130   :  { %v695_v36 = vmul.f32 0.03125, %v694_v35  ;;  %v696_v37 = vmul.f32 %v693_v33, %v693_v33 }
 0x132   :  { %v697_v38 = vsub.f32 %v695_v36, %v696_v37 }
 0x134   :  { %v698_v39 = vmax.f32 %v697_v38, 0.0 }
 0x136   :  { %v700_v40 = vadd.f32 1e-05, %v698_v39 }
 0x138   :  { %748 = vrsqrt.f32 %v700_v40  ;;  %vm707_vm1 = vweird.f32 %v700_v40 }
 0x13e   :  { %v749_v41 = vpop.eup %748 }
 0x13f   :  { %v702_v42 = vmul.f32 %v749_v41, %v700_v40  ;;  %vm708_vm0 = vweird.f32 %v749_v41 }
 0x140   :  { %vm709_vm2 = vmor %vm707_vm1, %vm708_vm0 }
 0x141   :  { %v703_v47 = vmul.f32 %v749_v41, %v702_v42 }
 0x143   :  { %v704_v52 = vmul.f32 0.5, %v703_v47 }
 0x145   :  { %v705_v46 = vsub.f32 1.5, %v704_v52 }
 0x147   :  { %v706_v49 = vmul.f32 %v749_v41, %v705_v46 }
 0x149   :  { %v710_v50 = vsel %vm709_vm2, %v749_v41, %v706_v49 }
 0x14a   :  { %v711_v51 = vmul.f32 %v710_v50, %v699_v48 }
 0x14c   :  { %v713_v44 = vmul.f32 %v711_v51, %v693_v33  ;;  %715 = vst [vmem:[%s957_s5] sm:$0x1] %v711_v51 }
 0x14e   :  { %v714_v43 = vsub.f32 %v712_v54, %v713_v44 }
 0x150   :  { %716 = vst [vmem:[%s957_s5 + $0x1] sm:$0x1] %v714_v43 }
 0x151   :  { %725 = vsyncpa [#allocation4], 1 }

// kernel: encoder_forward.5
= control target key start
LH: loop header
LB: loop body
LE: loop exit
PB: predicated region body
PF: predicated region fallthrough
CT: control target
= control target key end

     0   :  { %11 = vsyncpa [#allocation4], 0  ;;  %s772_s21 = smov [#allocation3]   ;;  %s773_s23 = smov 128   ;;  %s936_s0 = inlined_call_operand.vmem [shape: f32[2,26,128], index: 0, kind: input, shape index: {}]   ;;  %s937_s1 = inlined_call_operand.vmem [shape: f32[2,128], index: 1, kind: input, shape index: {}]   ;;  %s938_s2 = inlined_call_operand.hbm [shape: f32[11,128,128], index: 2, kind: input, shape index: {}]   ;;  %s939_s3 = inlined_call_operand.vmem [shape: f32[2,128], index: 3, kind: input, shape index: {}]   ;;  %s940_s4 = inlined_call_operand.vmem [shape: f32[2,26,128], index: 4, kind: output, shape index: {0}]   ;;  %s941_s5 = inlined_call_operand.vmem [shape: f32[2,128], index: 5, kind: output, shape index: {1}]  }
   0x1   :  { %s20_s20 = sshll.u32 %s938_s2, 4  ;;  %s22_s22 = sshll.u32 %s772_s21, 4  ;;  %s21_s20 = int_to_ptr.hbm [resolvable:$true] %s20_s20  ;;  %s23_s22 = int_to_ptr.vmem [resolvable:$true] %s22_s22 }
   0x2   :  { %s774_s24 = smov 8  }
   0x3   :  { %28 = dma.hbm_to_vmem [thread:$0]  %s21_s20, 22528, %s23_s22, [#allocation4], %s773_s23, %s773_s23, %s774_s24  }
   0x4   :  { %770 = dma.done.wait [#allocation4], 22528  }
   0x5   :  { %771 = vsyncadd [#allocation4], 4294944768  ;;  %v775_v0 = vmov 0.0   ;;  %v104_v1 = vld [vmem:[#allocation3 + $0xf8] sm:$0xff]  ;;  %v103_v5 = vld [vmem:[#allocation3 + $0xf0] sm:$0xff] }
   0x6   :  { %56 = vst [vmem:[#allocation2] sm:$0x1f] %v775_v0  ;;  %v83_v2 = vld [vmem:[#allocation3 + $0x78] sm:$0xff]  ;;  %105 = vmatpush.msra.mxu0 %v104_v1  ;;  %v82_v6 = vld [vmem:[#allocation3 + $0x70] sm:$0xff]  ;;  %v102_v9 = vld [vmem:[#allocation3 + $0xe8] sm:$0xff] }
   0x7   :  { %677 = vst [vmem:[%s940_s4] sm:$0x1f] %v775_v0  ;;  %v183_v3 = vld [vmem:[#allocation3 + $0x178] sm:$0xff]  ;;  %134 = vmatpush.msra.mxu1 %v83_v2  ;;  %v182_v7 = vld [vmem:[#allocation3 + $0x170] sm:$0xff]  ;;  %v81_v10 = vld [vmem:[#allocation3 + $0x68] sm:$0xff] }
   0x8   :  { %678 = vst [vmem:[%s940_s4 + $0x20] sm:$0x1f] %v775_v0  ;;  %v237_v4 = vld [vmem:[#allocation3 + $0x1f8] sm:$0xff]  ;;  %184 = vmatpush.msra.mxu2 %v183_v3  ;;  %v236_v8 = vld [vmem:[#allocation3 + $0x1f0] sm:$0xff]  ;;  %106 = vmatpush.msra.mxu0 %v103_v5  ;;  %v181_v11 = vld [vmem:[#allocation3 + $0x168] sm:$0xff] }
   0x9   :  { %679 = vst [vmem:[%s940_s4 + $0x15] sm:$0x1f] %v775_v0  ;;  %238 = vmatpush.msra.mxu3 %v237_v4  ;;  %135 = vmatpush.msra.mxu1 %v82_v6  ;;  %v235_v12 = vld [vmem:[#allocation3 + $0x1e8] sm:$0xff]  ;;  %v101_v13 = vld [vmem:[#allocation3 + $0xe0] sm:$0xff]  ;;  %v100_v17 = vld [vmem:[#allocation3 + $0xd8] sm:$0xff] }
   0xa   :  { %680 = vst [vmem:[%s940_s4 + $0x35] sm:$0x1f] %v775_v0  ;;  %185 = vmatpush.msra.mxu2 %v182_v7  ;;  %v80_v14 = vld [vmem:[#allocation3 + $0x60] sm:$0xff]  ;;  %107 = vmatpush.msra.mxu0 %v102_v9  ;;  %v79_v18 = vld [vmem:[#allocation3 + $0x58] sm:$0xff]  ;;  %v99_v21 = vld [vmem:[#allocation3 + $0xd0] sm:$0xff] }
   0xb   :  { %39 = vst [vmem:[%s941_s5] sm:$0x3] %v775_v0  ;;  %239 = vmatpush.msra.mxu3 %v236_v8  ;;  %136 = vmatpush.msra.mxu1 %v81_v10  ;;  %v180_v15 = vld [vmem:[#allocation3 + $0x160] sm:$0xff]  ;;  %v179_v19 = vld [vmem:[#allocation3 + $0x158] sm:$0xff]  ;;  %v78_v22 = vld [vmem:[#allocation3 + $0x50] sm:$0xff] }
   0xc   :  { %57 = vst [vmem:[#allocation2 + $0x20] sm:$0x1f] %v775_v0  ;;  %v234_v16 = vld [vmem:[#allocation3 + $0x1e0] sm:$0xff]  ;;  %186 = vmatpush.msra.mxu2 %v181_v11  ;;  %108 = vmatpush.msra.mxu0 %v101_v13  ;;  %v233_v20 = vld [vmem:[#allocation3 + $0x1d8] sm:$0xff]  ;;  %v178_v23 = vld [vmem:[#allocation3 + $0x150] sm:$0xff] }
   0xd   :  { %58 = vst [vmem:[#allocation2 + $0x15] sm:$0x1f] %v775_v0  ;;  %240 = vmatpush.msra.mxu3 %v235_v12  ;;  %137 = vmatpush.msra.mxu1 %v80_v14  ;;  %v232_v24 = vld [vmem:[#allocation3 + $0x1d0] sm:$0xff]  ;;  %v98_v25 = vld [vmem:[#allocation3 + $0xc8] sm:$0xff]  ;;  %v97_v29 = vld [vmem:[#allocation3 + $0xc0] sm:$0xff] }
   0xe   :  { %59 = vst [vmem:[#allocation2 + $0x35] sm:$0x1f] %v775_v0  ;;  %187 = vmatpush.msra.mxu2 %v180_v15  ;;  %109 = vmatpush.msra.mxu0 %v100_v17  ;;  %v77_v26 = vld [vmem:[#allocation3 + $0x48] sm:$0xff]  ;;  %v76_v30 = vld [vmem:[#allocation3 + $0x40] sm:$0xff]  ;;  %v96_v33 = vld [vmem:[#allocation3 + $0xb8] sm:$0xff] }
   0xf   :  { %241 = vmatpush.msra.mxu3 %v234_v16  ;;  %138 = vmatpush.msra.mxu1 %v79_v18  ;;  %v177_v27 = vld [vmem:[#allocation3 + $0x148] sm:$0xff]  ;;  %v176_v31 = vld [vmem:[#allocation3 + $0x140] sm:$0xff]  ;;  %v75_v34 = vld [vmem:[#allocation3 + $0x38] sm:$0xff] }
  0x10   :  { %188 = vmatpush.msra.mxu2 %v179_v19  ;;  %110 = vmatpush.msra.mxu0 %v99_v21  ;;  %v231_v28 = vld [vmem:[#allocation3 + $0x1c8] sm:$0xff]  ;;  %v230_v32 = vld [vmem:[#allocation3 + $0x1c0] sm:$0xff]  ;;  %v175_v35 = vld [vmem:[#allocation3 + $0x138] sm:$0xff] }
  0x11   :  { %242 = vmatpush.msra.mxu3 %v233_v20  ;;  %139 = vmatpush.msra.mxu1 %v78_v22  ;;  %v229_v36 = vld [vmem:[#allocation3 + $0x1b8] sm:$0xff]  ;;  %v95_v37 = vld [vmem:[#allocation3 + $0xb0] sm:$0xff]  ;;  %v94_v41 = vld [vmem:[#allocation3 + $0xa8] sm:$0xff] }
  0x12   :  { %189 = vmatpush.msra.mxu2 %v178_v23  ;;  %111 = vmatpush.msra.mxu0 %v98_v25  ;;  %v74_v38 = vld [vmem:[#allocation3 + $0x30] sm:$0xff]  ;;  %v73_v42 = vld [vmem:[#allocation3 + $0x28] sm:$0xff]  ;;  %v93_v45 = vld [vmem:[#allocation3 + $0xa0] sm:$0xff] }
  0x13   :  { %243 = vmatpush.msra.mxu3 %v232_v24  ;;  %140 = vmatpush.msra.mxu1 %v77_v26  ;;  %v174_v39 = vld [vmem:[#allocation3 + $0x130] sm:$0xff]  ;;  %v173_v43 = vld [vmem:[#allocation3 + $0x128] sm:$0xff]  ;;  %v72_v46 = vld [vmem:[#allocation3 + $0x20] sm:$0xff] }
  0x14   :  { %190 = vmatpush.msra.mxu2 %v177_v27  ;;  %112 = vmatpush.msra.mxu0 %v97_v29  ;;  %v228_v40 = vld [vmem:[#allocation3 + $0x1b0] sm:$0xff]  ;;  %v227_v44 = vld [vmem:[#allocation3 + $0x1a8] sm:$0xff]  ;;  %v172_v47 = vld [vmem:[#allocation3 + $0x120] sm:$0xff] }
  0x15   :  { %244 = vmatpush.msra.mxu3 %v231_v28  ;;  %141 = vmatpush.msra.mxu1 %v76_v30  ;;  %v226_v48 = vld [vmem:[#allocation3 + $0x1a0] sm:$0xff]  ;;  %v92_v49 = vld [vmem:[#allocation3 + $0x98] sm:$0xff]  ;;  %v91_v56 = vld [vmem:[#allocation3 + $0x90] sm:$0xff] }
  0x16   :  { %191 = vmatpush.msra.mxu2 %v176_v31  ;;  %113 = vmatpush.msra.mxu0 %v96_v33  ;;  %v71_v50 = vld [vmem:[#allocation3 + $0x18] sm:$0xff]  ;;  %v40_v51 = vld [vmem:[%s936_s0 + $0x5] sm:$0xff]  ;;  %v830_v52 = vld [vmem:[%s937_s1] ss:$0 sm:$0xff] }
  0x17   :  { %245 = vmatpush.msra.mxu3 %v230_v32  ;;  %142 = vmatpush.msra.mxu1 %v75_v34  ;;  %v835_v53 = vld [vmem:[%s937_s1 + $0x1] ss:$0 sm:$0xff]  ;;  %v171_v54 = vld [vmem:[#allocation3 + $0x118] sm:$0xff]  ;;  %v70_v57 = vld [vmem:[#allocation3 + $0x10] sm:$0xff]  ;;  %v46_v58 = vmul.f32 %v830_v52, %v40_v51 }
  0x18   :  { %192 = vmatpush.msra.mxu2 %v175_v35  ;;  %114 = vmatpush.msra.mxu0 %v95_v37  ;;  %v225_v55 = vld [vmem:[#allocation3 + $0x198] sm:$0xff]  ;;  %v170_v59 = vld [vmem:[#allocation3 + $0x110] sm:$0xff]  ;;  %v90_v61 = vld [vmem:[#allocation3 + $0x88] sm:$0xff] }
  0x19   :  { %246 = vmatpush.msra.mxu3 %v229_v36  ;;  %143 = vmatpush.msra.mxu1 %v74_v38  ;;  %v224_v60 = vld [vmem:[#allocation3 + $0x190] sm:$0xff]  ;;  %v69_v62 = vld [vmem:[#allocation3 + $0x8] sm:$0xff]  ;;  %v839_v63 = vadd.f32 %v835_v53, %v46_v58  ;;  %v89_v2 = vld [vmem:[#allocation3 + $0x80] sm:$0xff] }
  0x1a   :  { %193 = vmatpush.msra.mxu2 %v174_v39  ;;  %115 = vmatpush.msra.mxu0 %v94_v41  ;;  %v169_v0 = vld [vmem:[#allocation3 + $0x108] sm:$0xff]  ;;  %v68_v3 = vld [vmem:[#allocation3] sm:$0xff]  ;;  %v399_v8 = vld [vmem:[#allocation3 + $0x378] sm:$0xff] }
  0x1b   :  { %247 = vmatpush.msra.mxu3 %v228_v40  ;;  %144 = vmatpush.msra.mxu1 %v73_v42  ;;  %v223_v1 = vld [vmem:[#allocation3 + $0x188] sm:$0xff]  ;;  %60 = vst [vmem:[#allocation2 + $0x5] sm:$0xff] %v839_v63  ;;  %v168_v5 = vld [vmem:[#allocation3 + $0x100] sm:$0xff]  ;;  %v291_v9 = vld [vmem:[#allocation3 + $0x278] sm:$0xff] }
  0x1c   :  { %194 = vmatpush.msra.mxu2 %v173_v43  ;;  %116 = vmatpush.msra.mxu0 %v93_v45  ;;  %v41_v4 = vld [vmem:[%s936_s0 + $0xd] sm:$0xff]  ;;  %v222_v6 = vld [vmem:[#allocation3 + $0x180] sm:$0xff]  ;;  %v345_v10 = vld [vmem:[#allocation3 + $0x2f8] sm:$0xff] }
  0x1d   :  { %248 = vmatpush.msra.mxu3 %v227_v44  ;;  %145 = vmatpush.msra.mxu1 %v72_v46  ;;  %v47_v7 = vmul.f32 %v830_v52, %v41_v4  ;;  %v453_v11 = vld [vmem:[#allocation3 + $0x3f8] sm:$0xff]  ;;  %v398_v13 = vld [vmem:[#allocation3 + $0x370] sm:$0xff]  ;;  %v42_v17 = vld [vmem:[%s936_s0 + $0x25] sm:$0xff] }
  0x1e   :  { %195 = vmatpush.msra.mxu2 %v172_v47  ;;  %117 = vmatpush.msra.mxu0 %v92_v49  ;;  %v290_v14 = vld [vmem:[#allocation3 + $0x270] sm:$0xff]  ;;  %v48_v21 = vmul.f32 %v830_v52, %v42_v17  ;;  %v397_v23 = vld [vmem:[#allocation3 + $0x368] sm:$0xff]  ;;  %v396_v28 = vld [vmem:[#allocation3 + $0x360] sm:$0xff] }
  0x1f   :  { %249 = vmatpush.msra.mxu3 %v226_v48  ;;  %146 = vmatpush.msra.mxu1 %v71_v50  ;;  %v847_v12 = vadd.f32 %v835_v53, %v47_v7  ;;  %v344_v15 = vld [vmem:[#allocation3 + $0x2f0] sm:$0xff]  ;;  %v289_v24 = vld [vmem:[#allocation3 + $0x268] sm:$0xff]  ;;  %v288_v29 = vld [vmem:[#allocation3 + $0x260] sm:$0xff] }
  0x20   :  { %196 = vmatpush.msra.mxu2 %v171_v54  ;;  %118 = vmatpush.msra.mxu0 %v91_v56  ;;  %v452_v16 = vld [vmem:[#allocation3 + $0x3f0] sm:$0xff]  ;;  %v343_v25 = vld [vmem:[#allocation3 + $0x2e8] sm:$0xff]  ;;  %v855_v27 = vadd.f32 %v835_v53, %v48_v21  ;;  %v342_v30 = vld [vmem:[#allocation3 + $0x2e0] sm:$0xff] }
  0x21   :  { %250 = vmatpush.msra.mxu3 %v225_v55  ;;  %147 = vmatpush.msra.mxu1 %v70_v57  ;;  %61 = vst [vmem:[#allocation2 + $0xd] sm:$0xff] %v847_v12  ;;  %v451_v26 = vld [vmem:[#allocation3 + $0x3e8] sm:$0xff]  ;;  %v450_v31 = vld [vmem:[#allocation3 + $0x3e0] sm:$0xff]  ;;  %v395_v32 = vld [vmem:[#allocation3 + $0x358] sm:$0xff] }
  0x22   :  { %197 = vmatpush.msra.mxu2 %v170_v59  ;;  %119 = vmatpush.msra.mxu0 %v90_v61  ;;  %v84_v18 = vld [vmem:[#allocation2 + $0x1] sm:$0xff]  ;;  %62 = vst [vmem:[#allocation2 + $0x25] sm:$0xff] %v855_v27  ;;  %v287_v33 = vld [vmem:[#allocation3 + $0x258] sm:$0xff]  ;;  %v43_v38 = vld [vmem:[%s936_s0 + $0x2d] sm:$0xff] }
  0x23   :  { %251 = vmatpush.msra.mxu3 %v224_v60  ;;  %148 = vmatpush.msra.mxu1 %v69_v62  ;;  %v64_v19 = vld [vmem:[#allocation2] sm:$0xff]  ;;  %v341_v39 = vld [vmem:[#allocation3 + $0x2d8] sm:$0xff]  ;;  %v49_v41 = vmul.f32 %v830_v52, %v43_v38  ;;  %v394_v42 = vld [vmem:[#allocation3 + $0x350] sm:$0xff] }
  0x24   :  { %198 = vmatpush.msra.mxu2 %v169_v0  ;;  %120 = vmatpush.msra.mxu0 %v89_v2  ;;  %v163_v20 = vld [vmem:[#allocation2 + $0x2] sm:$0xff]  ;;  %v449_v40 = vld [vmem:[#allocation3 + $0x3d8] sm:$0xff]  ;;  %v286_v43 = vld [vmem:[#allocation3 + $0x250] sm:$0xff] }
  0x25   :  { %252 = vmatpush.msra.mxu3 %v223_v1  ;;  %149 = vmatpush.msra.mxu1 %v68_v3  ;;  %v217_v22 = vld [vmem:[#allocation2 + $0x3] sm:$0xff]  ;;  %v340_v44 = vld [vmem:[#allocation3 + $0x2d0] sm:$0xff]  ;;  %v872_v46 = vadd.f32 %v835_v53, %v49_v41  ;;  %v391_v59 = vld [vmem:[#allocation3 + $0x338] sm:$0xff] }
  0x26   :  { %199 = vmatpush.msra.mxu2 %v168_v5  ;;  %292 = vmatpush.msrb.mxu0 %v291_v9  ;;  %v448_v45 = vld [vmem:[#allocation3 + $0x3d0] sm:$0xff]  ;;  %v393_v47 = vld [vmem:[#allocation3 + $0x348] sm:$0xff]  ;;  %v392_v51 = vld [vmem:[#allocation3 + $0x340] sm:$0xff] }
  0x27   :  { %253 = vmatpush.msra.mxu3 %v222_v6  ;;  %346 = vmatpush.msrb.mxu1 %v345_v10  ;;  %v285_v48 = vld [vmem:[#allocation3 + $0x248] sm:$0xff]  ;;  %63 = vst [vmem:[#allocation2 + $0x2d] sm:$0xff] %v872_v46  ;;  %v284_v52 = vld [vmem:[#allocation3 + $0x240] sm:$0xff]  ;;  %v283_v60 = vld [vmem:[#allocation3 + $0x238] sm:$0xff] }
  0x28   :  { %400 = vmatpush.msrb.mxu2 %v399_v8  ;;  %293 = vmatpush.msrb.mxu0 %v290_v14  ;;  %v858_v34 = vld [vmem:[#allocation2 + $0x9] sm:$0xff]  ;;  %v338_v54 = vld [vmem:[#allocation3 + $0x2c0] sm:$0xff]  ;;  %v337_v61 = vld [vmem:[#allocation3 + $0x2b8] sm:$0xff] }
  0x29   :  { %454 = vmatpush.msrb.mxu3 %v453_v11  ;;  %121 = vmatmul.f32.vlgmr.msra.gmra.mxu0 %v84_v18  ;;  %v860_v35 = vld [vmem:[#allocation2 + $0x8] sm:$0xff]  ;;  %v446_v55 = vld [vmem:[#allocation3 + $0x3c0] sm:$0xff]  ;;  %v445_v62 = vld [vmem:[#allocation3 + $0x3b8] sm:$0xff] }
  0x2a   :  { %401 = vmatpush.msrb.mxu2 %v398_v13  ;;  %150 = vmatmul.f32.vlgmr.msra.gmra.mxu1 %v64_v19  ;;  %v862_v36 = vld [vmem:[#allocation2 + $0xa] sm:$0xff]  ;;  %v86_v53 = vld [vmem:[#allocation2 + $0x21] sm:$0xff]  ;;  %v387_v17 = vld [vmem:[#allocation3 + $0x318] sm:$0xff] }
  0x2b   :  { %200 = vmatmul.f32.vlgmr.msra.gmra.mxu2 %v163_v20  ;;  %254 = vmatmul.f32.vlgmr.msra.gmra.mxu3 %v217_v22  ;;  %v218_v37 = vld [vmem:[#allocation2 + $0xb] sm:$0xff]  ;;  %v66_v56 = vld [vmem:[#allocation2 + $0x20] sm:$0xff]  ;;  %v279_v18 = vld [vmem:[#allocation3 + $0x218] sm:$0xff] }
  0x2c   :  { %347 = vmatpush.msrb.mxu1 %v344_v15  ;;  %455 = vmatpush.msrb.mxu3 %v452_v16  ;;  %v339_v49 = vld [vmem:[#allocation3 + $0x2c8] sm:$0xff]  ;;  %v390_v0 = vld [vmem:[#allocation3 + $0x330] sm:$0xff]  ;;  %v388_v8 = vld [vmem:[#allocation3 + $0x320] sm:$0xff] }
  0x2d   :  { %402 = vmatpush.msrb.mxu2 %v397_v23  ;;  %294 = vmatpush.msrb.mxu0 %v289_v24  ;;  %v447_v50 = vld [vmem:[#allocation3 + $0x3c8] sm:$0xff]  ;;  %v282_v1 = vld [vmem:[#allocation3 + $0x230] sm:$0xff]  ;;  %v280_v9 = vld [vmem:[#allocation3 + $0x220] sm:$0xff] }
  0x2e   :  { %348 = vmatpush.msrb.mxu1 %v343_v25  ;;  %456 = vmatpush.msrb.mxu3 %v451_v26  ;;  %v165_v57 = vld [vmem:[#allocation2 + $0x22] sm:$0xff]  ;;  %v336_v2 = vld [vmem:[#allocation3 + $0x2b0] sm:$0xff]  ;;  %v333_v19 = vld [vmem:[#allocation3 + $0x298] sm:$0xff] }
  0x2f   :  { %403 = vmatpush.msrb.mxu2 %v396_v28  ;;  %295 = vmatpush.msrb.mxu0 %v288_v29  ;;  %v219_v58 = vld [vmem:[#allocation2 + $0x23] sm:$0xff]  ;;  %v444_v3 = vld [vmem:[#allocation3 + $0x3b0] sm:$0xff]  ;;  %v441_v20 = vld [vmem:[#allocation3 + $0x398] sm:$0xff] }
  0x30   :  { %349 = vmatpush.msrb.mxu1 %v342_v30  ;;  %457 = vmatpush.msrb.mxu3 %v450_v31  ;;  %v389_v4 = vld [vmem:[#allocation3 + $0x328] sm:$0xff]  ;;  %v334_v10 = vld [vmem:[#allocation3 + $0x2a0] sm:$0xff]  ;;  %v386_v21 = vld [vmem:[#allocation3 + $0x310] sm:$0xff] }
  0x31   :  { %404 = vmatpush.msrb.mxu2 %v395_v32  ;;  %296 = vmatpush.msrb.mxu0 %v287_v33  ;;  %v281_v5 = vld [vmem:[#allocation3 + $0x228] sm:$0xff]  ;;  %v442_v11 = vld [vmem:[#allocation3 + $0x3a0] sm:$0xff]  ;;  %v278_v22 = vld [vmem:[#allocation3 + $0x210] sm:$0xff] }
  0x32   :  { %124 = vmatmul.f32.gmra.mxu0 %v858_v34  ;;  %153 = vmatmul.f32.gmra.mxu1 %v860_v35  ;;  %v335_v6 = vld [vmem:[#allocation3 + $0x2a8] sm:$0xff]  ;;  %v332_v23 = vld [vmem:[#allocation3 + $0x290] sm:$0xff]  ;;  %v384_v30 = vld [vmem:[#allocation3 + $0x300] sm:$0xff] }
  0x33   :  { %203 = vmatmul.f32.gmra.mxu2 %v862_v36  ;;  %257 = vmatmul.f32.gmra.mxu3 %v218_v37  ;;  %v443_v7 = vld [vmem:[#allocation3 + $0x3a8] sm:$0xff]  ;;  %v440_v24 = vld [vmem:[#allocation3 + $0x390] sm:$0xff]  ;;  %v276_v31 = vld [vmem:[#allocation3 + $0x200] sm:$0xff] }
  0x34   :  { %350 = vmatpush.msrb.mxu1 %v341_v39  ;;  %458 = vmatpush.msrb.mxu3 %v449_v40  ;;  %v875_v13 = vld [vmem:[#allocation2 + $0x29] sm:$0xff]  ;;  %v330_v32 = vld [vmem:[#allocation3 + $0x280] sm:$0xff]  ;;  %v615_v40 = vld [vmem:[#allocation3 + $0x578] sm:$0xff] }
  0x35   :  { %405 = vmatpush.msrb.mxu2 %v394_v42  ;;  %297 = vmatpush.msrb.mxu0 %v286_v43  ;;  %v877_v14 = vld [vmem:[#allocation2 + $0x28] sm:$0xff]  ;;  %v438_v33 = vld [vmem:[#allocation3 + $0x380] sm:$0xff]  ;;  %v507_v41 = vld [vmem:[#allocation3 + $0x478] sm:$0xff] }
  0x36   :  { %351 = vmatpush.msrb.mxu1 %v340_v44  ;;  %459 = vmatpush.msrb.mxu3 %v448_v45  ;;  %v879_v15 = vld [vmem:[#allocation2 + $0x2a] sm:$0xff]  ;;  %v561_v42 = vld [vmem:[#allocation3 + $0x4f8] sm:$0xff] }
  0x37   :  { %406 = vmatpush.msrb.mxu2 %v393_v47  ;;  %298 = vmatpush.msrb.mxu0 %v285_v48  ;;  %v220_v16 = vld [vmem:[#allocation2 + $0x2b] sm:$0xff] }
  0x38   :  { %352 = vmatpush.msrb.mxu1 %v339_v49  ;;  %460 = vmatpush.msrb.mxu3 %v447_v50  ;;  %v385_v25 = vld [vmem:[#allocation3 + $0x308] sm:$0xff]  ;;  %v614_v43 = vld [vmem:[#allocation3 + $0x570] sm:$0xff]  ;;  %v612_v50 = vld [vmem:[#allocation3 + $0x560] sm:$0xff] }
  0x39   :  { %407 = vmatpush.msrb.mxu2 %v392_v51  ;;  %299 = vmatpush.msrb.mxu0 %v284_v52  ;;  %v277_v26 = vld [vmem:[#allocation3 + $0x208] sm:$0xff]  ;;  %v506_v44 = vld [vmem:[#allocation3 + $0x470] sm:$0xff]  ;;  %v504_v51 = vld [vmem:[#allocation3 + $0x460] sm:$0xff] }
  0x3a   :  { %353 = vmatpush.msrb.mxu1 %v338_v54  ;;  %461 = vmatpush.msrb.mxu3 %v446_v55  ;;  %v331_v28 = vld [vmem:[#allocation3 + $0x288] sm:$0xff]  ;;  %v560_v45 = vld [vmem:[#allocation3 + $0x4f0] sm:$0xff] }
  0x3b   :  { %127 = vmatmul.f32.gmra.mxu0 %v86_v53  ;;  %156 = vmatmul.f32.gmra.mxu1 %v66_v56  ;;  %v439_v29 = vld [vmem:[#allocation3 + $0x388] sm:$0xff]  ;;  %v611_v53 = vld [vmem:[#allocation3 + $0x558] sm:$0xff] }
  0x3c   :  { %206 = vmatmul.f32.gmra.mxu2 %v165_v57  ;;  %260 = vmatmul.f32.gmra.mxu3 %v219_v58  ;;  %v271_v37 = vld [vmem:[#allocation2 + $0x4] sm:$0xff]  ;;  %v272_v52 = vld [vmem:[#allocation2 + $0xc] sm:$0xff]  ;;  %v503_v56 = vld [vmem:[#allocation3 + $0x458] sm:$0xff] }
  0x3d   :  { %408 = vmatpush.msrb.mxu2 %v391_v59  ;;  %300 = vmatpush.msrb.mxu0 %v283_v60  ;;  %v379_v38 = vld [vmem:[#allocation2 + $0x6] sm:$0xff]  ;;  %v380_v54 = vld [vmem:[#allocation2 + $0xe] sm:$0xff]  ;;  %v557_v57 = vld [vmem:[#allocation3 + $0x4d8] sm:$0xff] }
  0x3e   :  { %354 = vmatpush.msrb.mxu1 %v337_v61  ;;  %462 = vmatpush.msrb.mxu3 %v445_v62  ;;  %v433_v39 = vld [vmem:[#allocation2 + $0x7] sm:$0xff]  ;;  %v434_v55 = vld [vmem:[#allocation2 + $0xf] sm:$0xff] }
  0x3f   :  { %409 = vmatpush.msrb.mxu2 %v390_v0  ;;  %301 = vmatpush.msrb.mxu0 %v282_v1  ;;  %v613_v47 = vld [vmem:[#allocation3 + $0x568] sm:$0xff]  ;;  %v610_v58 = vld [vmem:[#allocation3 + $0x550] sm:$0xff]  ;;  %v608_v1 = vld [vmem:[#allocation3 + $0x540] sm:$0xff] }
  0x40   :  { %355 = vmatpush.msrb.mxu1 %v336_v2  ;;  %463 = vmatpush.msrb.mxu3 %v444_v3  ;;  %v505_v48 = vld [vmem:[#allocation3 + $0x468] sm:$0xff]  ;;  %v502_v59 = vld [vmem:[#allocation3 + $0x450] sm:$0xff]  ;;  %v500_v2 = vld [vmem:[#allocation3 + $0x440] sm:$0xff] }
  0x41   :  { %410 = vmatpush.msrb.mxu2 %v389_v4  ;;  %302 = vmatpush.msrb.mxu0 %v281_v5  ;;  %v559_v49 = vld [vmem:[#allocation3 + $0x4e8] sm:$0xff]  ;;  %v556_v60 = vld [vmem:[#allocation3 + $0x4d0] sm:$0xff] }
  0x42   :  { %356 = vmatpush.msrb.mxu1 %v335_v6  ;;  %464 = vmatpush.msrb.mxu3 %v443_v7  ;;  %v609_v61 = vld [vmem:[#allocation3 + $0x548] sm:$0xff]  ;;  %v607_v6 = vld [vmem:[#allocation3 + $0x538] sm:$0xff] }
  0x43   :  { %411 = vmatpush.msrb.mxu2 %v388_v8  ;;  %303 = vmatpush.msrb.mxu0 %v280_v9  ;;  %v501_v62 = vld [vmem:[#allocation3 + $0x448] sm:$0xff]  ;;  %v499_v7 = vld [vmem:[#allocation3 + $0x438] sm:$0xff]  ;;  %v606_v9 = vld [vmem:[#allocation3 + $0x530] sm:$0xff] }
  0x44   :  { %357 = vmatpush.msrb.mxu1 %v334_v10  ;;  %465 = vmatpush.msrb.mxu3 %v442_v11  ;;  %v555_v0 = vld [vmem:[#allocation3 + $0x4c8] sm:$0xff]  ;;  %v553_v8 = vld [vmem:[#allocation3 + $0x4b8] sm:$0xff]  ;;  %v498_v10 = vld [vmem:[#allocation3 + $0x430] sm:$0xff] }
  0x45   :  { %130 = vmatmul.f32.gmra.mxu0 %v875_v13  ;;  %159 = vmatmul.f32.gmra.mxu1 %v877_v14  ;;  %v273_v3 = vld [vmem:[#allocation2 + $0x24] sm:$0xff]  ;;  %v552_v11 = vld [vmem:[#allocation3 + $0x4b0] sm:$0xff] }
  0x46   :  { %209 = vmatmul.f32.gmra.mxu2 %v879_v15  ;;  %263 = vmatmul.f32.gmra.mxu3 %v220_v16  ;;  %v381_v4 = vld [vmem:[#allocation2 + $0x26] sm:$0xff] }
  0x47   :  { %412 = vmatpush.msrb.mxu2 %v387_v17  ;;  %304 = vmatpush.msrb.mxu0 %v279_v18  ;;  %v435_v5 = vld [vmem:[#allocation2 + $0x27] sm:$0xff] }
  0x48   :  { %358 = vmatpush.msrb.mxu1 %v333_v19  ;;  %466 = vmatpush.msrb.mxu3 %v441_v20  ;;  %v605_v16 = vld [vmem:[#allocation3 + $0x528] sm:$0xff]  ;;  %v604_v19 = vld [vmem:[#allocation3 + $0x520] sm:$0xff] }
  0x49   :  { %413 = vmatpush.msrb.mxu2 %v386_v21  ;;  %305 = vmatpush.msrb.mxu0 %v278_v22  ;;  %v497_v17 = vld [vmem:[#allocation3 + $0x428] sm:$0xff]  ;;  %v496_v20 = vld [vmem:[#allocation3 + $0x420] sm:$0xff] }
  0x4a   :  { %359 = vmatpush.msrb.mxu1 %v332_v23  ;;  %467 = vmatpush.msrb.mxu3 %v440_v24  ;;  %v551_v18 = vld [vmem:[#allocation3 + $0x4a8] sm:$0xff]  ;;  %v603_v24 = vld [vmem:[#allocation3 + $0x518] sm:$0xff] }
  0x4b   :  { %414 = vmatpush.msrb.mxu2 %v385_v25  ;;  %306 = vmatpush.msrb.mxu0 %v277_v26  ;;  %v274_v21 = vld [vmem:[#allocation2 + $0x2c] sm:$0xff]  ;;  %v495_v25 = vld [vmem:[#allocation3 + $0x418] sm:$0xff] }
  0x4c   :  { %360 = vmatpush.msrb.mxu1 %v331_v28  ;;  %468 = vmatpush.msrb.mxu3 %v439_v29  ;;  %v382_v22 = vld [vmem:[#allocation2 + $0x2e] sm:$0xff]  ;;  %v549_v26 = vld [vmem:[#allocation3 + $0x498] sm:$0xff] }
  0x4d   :  { %415 = vmatpush.msrb.mxu2 %v384_v30  ;;  %307 = vmatpush.msrb.mxu0 %v276_v31  ;;  %v436_v23 = vld [vmem:[#allocation2 + $0x2f] sm:$0xff] }
  0x4e   :  { %361 = vmatpush.msrb.mxu1 %v330_v32  ;;  %469 = vmatpush.msrb.mxu3 %v438_v33  ;;  %v602_v28 = vld [vmem:[#allocation3 + $0x510] sm:$0xff]  ;;  %v601_v31 = vld [vmem:[#allocation3 + $0x508] sm:$0xff] }
  0x4f   :  { %308 = vmatmul.f32.vlgmr.msrb.gmra.mxu0 %v271_v37  ;;  %362 = vmatmul.f32.vlgmr.msrb.gmra.mxu1 %v839_v63  ;;  %v558_v63 = vld [vmem:[#allocation3 + $0x4e0] sm:$0xff]  ;;  %v494_v29 = vld [vmem:[#allocation3 + $0x410] sm:$0xff]  ;;  %v493_v32 = vld [vmem:[#allocation3 + $0x408] sm:$0xff] }
  0x50   :  { %416 = vmatmul.f32.vlgmr.msrb.gmra.mxu2 %v379_v38  ;;  %470 = vmatmul.f32.vlgmr.msrb.gmra.mxu3 %v433_v39  ;;  %v548_v30 = vld [vmem:[#allocation3 + $0x490] sm:$0xff]  ;;  %v547_v33 = vld [vmem:[#allocation3 + $0x488] sm:$0xff]  ;;  %v600_v37 = vld [vmem:[#allocation3 + $0x500] sm:$0xff] }
  0x51   :  { %616 = vmatpush.msra.mxu2 %v615_v40  ;;  %508 = vmatpush.msra.mxu0 %v507_v41  ;;  %v492_v38 = vld [vmem:[#allocation3 + $0x400] sm:$0xff]  ;;  %v488_v39 = vld [vmem:[#allocation2 + $0x10] sm:$0xff] }
  0x52   :  { %722 = vmatpush.msra.mxu3 %v507_v41  ;;  %562 = vmatpush.msra.mxu1 %v561_v42  ;;  %v542_v40 = vld [vmem:[#allocation2 + $0x11] sm:$0xff] }
  0x53   :  { %617 = vmatpush.msra.mxu2 %v614_v43  ;;  %509 = vmatpush.msra.mxu0 %v506_v44  ;;  %v596_v41 = vld [vmem:[#allocation2 + $0x12] sm:$0xff] }
  0x54   :  { %723 = vmatpush.msra.mxu3 %v506_v44  ;;  %563 = vmatpush.msra.mxu1 %v560_v45  ;;  %v490_v42 = vld [vmem:[#allocation2 + $0x30] sm:$0xff] }
  0x55   :  { %618 = vmatpush.msra.mxu2 %v613_v47  ;;  %510 = vmatpush.msra.mxu0 %v505_v48  ;;  %v544_v43 = vld [vmem:[#allocation2 + $0x31] sm:$0xff] }
  0x56   :  { %724 = vmatpush.msra.mxu3 %v505_v48  ;;  %564 = vmatpush.msra.mxu1 %v559_v49  ;;  %v598_v44 = vld [vmem:[#allocation2 + $0x32] sm:$0xff] }
  0x57   :  { %619 = vmatpush.msra.mxu2 %v612_v50  ;;  %511 = vmatpush.msra.mxu0 %v504_v51 }
  0x58   :  { %725 = vmatpush.msra.mxu3 %v504_v51  ;;  %565 = vmatpush.msra.mxu1 %v558_v63 }
  0x59   :  { %311 = vmatmul.f32.gmra.mxu0 %v272_v52  ;;  %365 = vmatmul.f32.gmra.mxu1 %v847_v12  ;;  %v554_v12 = vld [vmem:[#allocation3 + $0x4c0] sm:$0xff] }
  0x5a   :  { %419 = vmatmul.f32.gmra.mxu2 %v380_v54  ;;  %473 = vmatmul.f32.gmra.mxu3 %v434_v55 }
  0x5b   :  { %620 = vmatpush.msra.mxu2 %v611_v53  ;;  %512 = vmatpush.msra.mxu0 %v503_v56 }
  0x5c   :  { %726 = vmatpush.msra.mxu3 %v503_v56  ;;  %566 = vmatpush.msra.mxu1 %v557_v57 }
  0x5d   :  { %621 = vmatpush.msra.mxu2 %v610_v58  ;;  %513 = vmatpush.msra.mxu0 %v502_v59 }
  0x5e   :  { %727 = vmatpush.msra.mxu3 %v502_v59  ;;  %567 = vmatpush.msra.mxu1 %v556_v60 }
  0x5f   :  { %622 = vmatpush.msra.mxu2 %v609_v61  ;;  %514 = vmatpush.msra.mxu0 %v501_v62 }
  0x60   :  { %728 = vmatpush.msra.mxu3 %v501_v62  ;;  %568 = vmatpush.msra.mxu1 %v555_v0 }
  0x61   :  { %623 = vmatpush.msra.mxu2 %v608_v1  ;;  %515 = vmatpush.msra.mxu0 %v500_v2 }
  0x62   :  { %729 = vmatpush.msra.mxu3 %v500_v2  ;;  %569 = vmatpush.msra.mxu1 %v554_v12 }
  0x63   :  { %314 = vmatmul.f32.gmra.mxu0 %v273_v3  ;;  %368 = vmatmul.f32.gmra.mxu1 %v855_v27  ;;  %v550_v27 = vld [vmem:[#allocation3 + $0x4a0] sm:$0xff] }
  0x64   :  { %422 = vmatmul.f32.gmra.mxu2 %v381_v4  ;;  %476 = vmatmul.f32.gmra.mxu3 %v435_v5 }
  0x65   :  { %624 = vmatpush.msra.mxu2 %v607_v6  ;;  %516 = vmatpush.msra.mxu0 %v499_v7 }
  0x66   :  { %730 = vmatpush.msra.mxu3 %v499_v7  ;;  %570 = vmatpush.msra.mxu1 %v553_v8 }
  0x67   :  { %625 = vmatpush.msra.mxu2 %v606_v9  ;;  %517 = vmatpush.msra.mxu0 %v498_v10 }
  0x68   :  { %731 = vmatpush.msra.mxu3 %v498_v10  ;;  %571 = vmatpush.msra.mxu1 %v552_v11 }
  0x69   :  { %626 = vmatpush.msra.mxu2 %v605_v16  ;;  %518 = vmatpush.msra.mxu0 %v497_v17 }
  0x6a   :  { %732 = vmatpush.msra.mxu3 %v497_v17  ;;  %572 = vmatpush.msra.mxu1 %v551_v18 }
  0x6b   :  { %627 = vmatpush.msra.mxu2 %v604_v19  ;;  %519 = vmatpush.msra.mxu0 %v496_v20 }
  0x6c   :  { %733 = vmatpush.msra.mxu3 %v496_v20  ;;  %573 = vmatpush.msra.mxu1 %v550_v27 }
  0x6d   :  { %317 = vmatmul.f32.gmra.mxu0 %v274_v21  ;;  %371 = vmatmul.f32.gmra.mxu1 %v872_v46  ;;  %v546_v46 = vld [vmem:[#allocation3 + $0x480] sm:$0xff] }
  0x6e   :  { %425 = vmatmul.f32.gmra.mxu2 %v382_v22  ;;  %479 = vmatmul.f32.gmra.mxu3 %v436_v23 }
  0x6f   :  { %628 = vmatpush.msra.mxu2 %v603_v24  ;;  %520 = vmatpush.msra.mxu0 %v495_v25 }
  0x70   :  { %734 = vmatpush.msra.mxu3 %v495_v25  ;;  %574 = vmatpush.msra.mxu1 %v549_v26 }
  0x71   :  { %629 = vmatpush.msra.mxu2 %v602_v28  ;;  %521 = vmatpush.msra.mxu0 %v494_v29 }
  0x72   :  { %735 = vmatpush.msra.mxu3 %v494_v29  ;;  %575 = vmatpush.msra.mxu1 %v548_v30 }
  0x73   :  { %630 = vmatpush.msra.mxu2 %v601_v31  ;;  %522 = vmatpush.msra.mxu0 %v493_v32 }
  0x74   :  { %736 = vmatpush.msra.mxu3 %v493_v32  ;;  %576 = vmatpush.msra.mxu1 %v547_v33 }
  0x75   :  { %631 = vmatpush.msra.mxu2 %v600_v37  ;;  %523 = vmatpush.msra.mxu0 %v492_v38 }
  0x76   :  { %737 = vmatpush.msra.mxu3 %v492_v38  ;;  %577 = vmatpush.msra.mxu1 %v546_v46 }
  0x77   :  { %524 = vmatmul.f32.vlgmr.msra.gmra.mxu0 %v860_v35  ;;  %527 = vmatmul.f32.vlgmr.msra.gmra.mxu3 %v488_v39 }
  0x78   :  { %578 = vmatmul.f32.vlgmr.msra.gmra.mxu1 %v858_v34  ;;  %632 = vmatmul.f32.vlgmr.msra.gmra.mxu2 %v862_v36 }
  0x7f   :  { %530 = vmatmul.f32.gmra.mxu3 %v877_v14 }
  0x80   :  { %581 = vmatmul.f32.gmra.mxu1 %v542_v40  ;;  %635 = vmatmul.f32.gmra.mxu2 %v596_v41 }
  0x87   :  { %533 = vmatmul.f32.gmra.mxu3 %v490_v42 }
  0x88   :  { %584 = vmatmul.f32.gmra.mxu1 %v875_v13  ;;  %638 = vmatmul.f32.gmra.mxu2 %v879_v15 }
  0x90   :  { %587 = vmatmul.f32.gmra.mxu1 %v544_v43  ;;  %641 = vmatmul.f32.gmra.mxu2 %v598_v44 }
  0xa6   :  { %v122_v35 = vpop.f32.mrf.mxu0 }
  0xa7   :  { %v151_v34 = vpop.f32.mrf.mxu1 }
  0xa8   :  { %v152_v0 = vadd.f32 %v151_v34, %v122_v35 }
  0xae   :  { %v201_v45 = vpop.f32.mrf.mxu2  ;;  %v255_v36 = vpop.f32.mrf.mxu3 }
  0xaf   :  { %v125_v47 = vpop.f32.mrf.mxu0  ;;  %v154_v48 = vpop.f32.mrf.mxu1  ;;  %v213_v12 = vadd.f32 %v201_v45, %v152_v0 }
  0xb0   :  { %v155_v6 = vadd.f32 %v154_v48, %v125_v47 }
  0xb1   :  { %v267_v5 = vadd.f32 %v255_v36, %v213_v12 }
  0xb6   :  { %v204_v49 = vpop.f32.mrf.mxu2  ;;  %v258_v14 = vpop.f32.mrf.mxu3 }
  0xb7   :  { %v214_v10 = vadd.f32 %v204_v49, %v155_v6 }
  0xb8   :  { %v128_v50 = vpop.f32.mrf.mxu0  ;;  %v157_v51 = vpop.f32.mrf.mxu1 }
  0xb9   :  { %v268_v16 = vadd.f32 %v258_v14, %v214_v10  ;;  %v158_v17 = vadd.f32 %v157_v51, %v128_v50 }
  0xbf   :  { %v207_v63 = vpop.f32.mrf.mxu2  ;;  %v261_v52 = vpop.f32.mrf.mxu3 }
  0xc0   :  { %v215_v21 = vadd.f32 %v207_v63, %v158_v17 }
  0xc2   :  { %v131_v54 = vpop.f32.mrf.mxu0  ;;  %v160_v13 = vpop.f32.mrf.mxu1  ;;  %v269_v28 = vadd.f32 %v261_v52, %v215_v21 }
  0xc3   :  { %v161_v29 = vadd.f32 %v160_v13, %v131_v54 }
  0xc9   :  { %v210_v55 = vpop.f32.mrf.mxu2  ;;  %v264_v15 = vpop.f32.mrf.mxu3 }
  0xca   :  { %v216_v38 = vadd.f32 %v210_v55, %v161_v29 }
  0xcc   :  { %v309_v53 = vpop.f32.mrf.mxu0  ;;  %v363_v56 = vpop.f32.mrf.mxu1  ;;  %v270_v43 = vadd.f32 %v264_v15, %v216_v38 }
  0xcd   :  { %v321_v7 = vadd.f32 %v309_v53, %v267_v5 }
  0xcf   :  { %v375_v11 = vadd.f32 %v363_v56, %v321_v7 }
  0xd3   :  { %v417_v57 = vpop.f32.mrf.mxu2  ;;  %v471_v58 = vpop.f32.mrf.mxu3 }
  0xd4   :  { %v429_v18 = vadd.f32 %v417_v57, %v375_v11 }
  0xd6   :  { %v312_v59 = vpop.f32.mrf.mxu0  ;;  %v366_v60 = vpop.f32.mrf.mxu1  ;;  %v483_v22 = vadd.f32 %v471_v58, %v429_v18  ;;  %v649_v18 = vld [vmem:[%s941_s5] sm:$0x1] }
  0xd7   :  { %v322_v27 = vadd.f32 %v312_v59, %v268_v16 }
  0xd9   :  { %v376_v25 = vadd.f32 %v366_v60, %v322_v27  ;;  %v661_v27 = vld [vmem:[%s941_s5 + $0x1] sm:$0x1] }
  0xdd   :  { %v420_v61 = vpop.f32.mrf.mxu2  ;;  %v474_v62 = vpop.f32.mrf.mxu3 }
  0xde   :  { %v430_v30 = vadd.f32 %v420_v61, %v376_v25 }
  0xe0   :  { %v315_v1 = vpop.f32.mrf.mxu0  ;;  %v369_v2 = vpop.f32.mrf.mxu1  ;;  %v484_v46 = vadd.f32 %v474_v62, %v430_v30 }
  0xe1   :  { %v323_v31 = vadd.f32 %v315_v1, %v269_v28 }
  0xe3   :  { %v377_v41 = vadd.f32 %v369_v2, %v323_v31 }
  0xe7   :  { %v423_v3 = vpop.f32.mrf.mxu2  ;;  %v477_v4 = vpop.f32.mrf.mxu3 }
  0xe8   :  { %v431_v44 = vadd.f32 %v423_v3, %v377_v41 }
  0xea   :  { %v318_v8 = vpop.f32.mrf.mxu0  ;;  %v372_v9 = vpop.f32.mrf.mxu1  ;;  %v485_v47 = vadd.f32 %v477_v4, %v431_v44  ;;  %v708_v44 = vld [vmem:[%s939_s3 + $0x1] sm:$0x1] }
  0xeb   :  { %v324_v35 = vadd.f32 %v318_v8, %v270_v43 }
  0xed   :  { %v378_v14 = vadd.f32 %v372_v9, %v324_v35 }
  0xf1   :  { %v426_v19 = vpop.f32.mrf.mxu2  ;;  %v480_v20 = vpop.f32.mrf.mxu3 }
  0xf2   :  { %v432_v51 = vadd.f32 %v426_v19, %v378_v14 }
  0xf4   :  { %v525_v23 = vpop.f32.mrf.mxu0  ;;  %v486_v13 = vadd.f32 %v480_v20, %v432_v51 }
  0xf5   :  { %v579_v24 = vpop.f32.mrf.mxu1  ;;  %v537_v26 = vadd.f32 %v525_v23, %v483_v22 }
  0xf7   :  { %v591_v32 = vadd.f32 %v579_v24, %v537_v26 }
  0xfa   :  { %v528_v33 = vpop.f32.mrf.mxu3 }
  0xfb   :  { %v633_v37 = vpop.f32.mrf.mxu2  ;;  %v538_v42 = vadd.f32 %v528_v33, %v484_v46 }
  0xfc   :  { %v645_v39 = vadd.f32 %v633_v37, %v591_v32 }
  0xfd   :  { %v582_v40 = vpop.f32.mrf.mxu1 }
  0xfe   :  { %681 = vst [vmem:[%s940_s4 + $0x5] sm:$0xff] %v645_v39  ;;  %v592_v34 = vadd.f32 %v582_v40, %v538_v42  ;;  %v662_v57 = vmul.f32 %v645_v39, %v645_v39  ;;  %v695_v40 = vld [vmem:[%s939_s3] sm:$0x1] }
 0x102   :  { %v531_v45 = vpop.f32.mrf.mxu3 }
 0x103   :  { %v636_v36 = vpop.f32.mrf.mxu2  ;;  %v539_v50 = vadd.f32 %v531_v45, %v485_v47 }
 0x104   :  { %v646_v48 = vadd.f32 %v636_v36, %v592_v34 }
 0x105   :  { %v585_v49 = vpop.f32.mrf.mxu1 }
 0x106   :  { %682 = vst [vmem:[%s940_s4 + $0xd] sm:$0xff] %v646_v48  ;;  %v593_v63 = vadd.f32 %v585_v49, %v539_v50  ;;  %v663_v56 = vmul.f32 %v646_v48, %v646_v48  ;;  %v650_v58 = vadd.f32 %v646_v48, %v645_v39 }
 0x108   :  { %v666_v62 = vadd.f32 %v663_v56, %v662_v57 }
 0x10a   :  { %v534_v52 = vpop.f32.mrf.mxu3 }
 0x10b   :  { %v639_v54 = vpop.f32.mrf.mxu2  ;;  %v540_v15 = vadd.f32 %v534_v52, %v486_v13 }
 0x10c   :  { %v647_v55 = vadd.f32 %v639_v54, %v593_v63 }
 0x10d   :  { %v588_v53 = vpop.f32.mrf.mxu1 }
 0x10e   :  { %683 = vst [vmem:[%s940_s4 + $0x25] sm:$0xff] %v647_v55  ;;  %v664_v59 = vmul.f32 %v647_v55, %v647_v55  ;;  %v594_v60 = vadd.f32 %v588_v53, %v540_v15  ;;  %v651_v0 = vadd.f32 %v650_v58, %v647_v55 }
 0x110   :  { %v667_v2 = vadd.f32 %v666_v62, %v664_v59 }
 0x113   :  { %v642_v61 = vpop.f32.mrf.mxu2 }
 0x114   :  { %v648_v1 = vadd.f32 %v642_v61, %v594_v60 }
 0x116   :  { %v652_v12 = vadd.f32 %v651_v0, %v648_v1  ;;  %v665_v3 = vmul.f32 %v648_v1, %v648_v1  ;;  %684 = vst [vmem:[%s940_s4 + $0x2d] sm:$0xff] %v648_v1 }
 0x118   :  { %v653_v4 = vrot.slane %v652_v12, 4  ;;  %v668_v5 = vadd.f32 %v667_v2, %v665_v3 }
 0x11a   :  { %v654_v6 = vadd.f32 %v653_v4, %v652_v12  ;;  %v669_v7 = vrot.slane %v668_v5, 4 }
 0x11c   :  { %v655_v8 = vrot.slane %v654_v6, 2  ;;  %v670_v9 = vadd.f32 %v669_v7, %v668_v5 }
 0x11e   :  { %v656_v10 = vadd.f32 %v655_v8, %v654_v6  ;;  %v671_v11 = vrot.slane %v670_v9, 2 }
 0x120   :  { %v657_v16 = vrot.slane %v656_v10, 1  ;;  %v672_v17 = vadd.f32 %v671_v11, %v670_v9 }
 0x122   :  { %v658_v19 = vadd.f32 %v657_v16, %v656_v10  ;;  %v673_v20 = vrot.slane %v672_v17, 1 }
 0x124   :  { %v659_v21 = vadd.f32 %v658_v19, %v649_v18  ;;  %v674_v22 = vadd.f32 %v673_v20, %v672_v17 }
 0x126   :  { %660 = vst [vmem:[%s941_s5] sm:$0x1] %v659_v21  ;;  %v675_v23 = vadd.f32 %v674_v22, %v661_v27 }
 0x128   :  { %676 = vst [vmem:[%s941_s5 + $0x1] sm:$0x1] %v675_v23 }
 0x12d   :  { %v688_v24 = vld [vmem:[%s941_s5] sm:$0x1] }
 0x12e   :  { %v689_v25 = vmul.f32 0.03125, %v688_v24 }
 0x12f   :  { %v690_v26 = vld [vmem:[%s941_s5 + $0x1] sm:$0x1] }
 0x130   :  { %v691_v28 = vmul.f32 0.03125, %v690_v26  ;;  %v692_v29 = vmul.f32 %v689_v25, %v689_v25 }
 0x132   :  { %v693_v30 = vsub.f32 %v691_v28, %v692_v29 }
 0x134   :  { %v694_v31 = vmax.f32 %v693_v30, 0.0 }
 0x136   :  { %v696_v32 = vadd.f32 1e-05, %v694_v31 }
 0x138   :  { %744 = vrsqrt.f32 %v696_v32  ;;  %vm703_vm1 = vweird.f32 %v696_v32 }
 0x13e   :  { %v745_v33 = vpop.eup %744 }
 0x13f   :  { %v698_v37 = vmul.f32 %v745_v33, %v696_v32  ;;  %vm704_vm0 = vweird.f32 %v745_v33 }
 0x140   :  { %vm705_vm2 = vmor %vm703_vm1, %vm704_vm0 }
 0x141   :  { %v699_v38 = vmul.f32 %v745_v33, %v698_v37 }
 0x143   :  { %v700_v46 = vmul.f32 0.5, %v699_v38 }
 0x145   :  { %v701_v39 = vsub.f32 1.5, %v700_v46 }
 0x147   :  { %v702_v41 = vmul.f32 %v745_v33, %v701_v39 }
 0x149   :  { %v706_v42 = vsel %vm705_vm2, %v745_v33, %v702_v41 }
 0x14a   :  { %v707_v43 = vmul.f32 %v706_v42, %v695_v40 }
 0x14c   :  { %v709_v35 = vmul.f32 %v707_v43, %v689_v25  ;;  %711 = vst [vmem:[%s941_s5] sm:$0x1] %v707_v43 }
 0x14e   :  { %v710_v34 = vsub.f32 %v708_v44, %v709_v35 }
 0x150   :  { %712 = vst [vmem:[%s941_s5 + $0x1] sm:$0x1] %v710_v34 }
 0x151   :  { %721 = vsyncpa [#allocation4], 1 }

</bundles_post_ra>
